<compile_context>
chip_gen: v5e
topology: v5e:2x2
jax: 0.10.0
libtpu: 0.0.40
codegen_flags: <defaults>
</compile_context>

<pallas_src>
import functools
import math

import jax
import jax.numpy as jnp
from jax import lax
from jax.experimental import pallas as pl
from jax.experimental.pallas import tpu as pltpu


# ------------------------------ Pallas kernel ------------------------------

def _interaction_kernel(d_feature, ln_eps,
                        det_ref, rel_ref,
                        w_dv_ref, b_dv_ref,
                        w_rel_ref, b_rel_ref,
                        gamma_ref, beta_ref,
                        out_ref):
    """TB batch elements per grid step.

    det_ref: [TB, Q, D] bf16 ; rel_ref: [TB, Q, D] f32
    w_dv_ref: [D, 2F] bf16 ; b_dv_ref: [1, 2F] f32
    w_rel_ref: [D, F] bf16 (1/sqrt(F) pre-folded) ; b_rel_ref: [1, F] f32
    gamma/beta: [1, D] f32 ; out_ref: [TB, Q, D] f32
    """
    F = d_feature
    tb, q, d = det_ref.shape

    det2 = det_ref[...].reshape(tb * q, d)                   # bf16 [TB*Q, D]
    rel = rel_ref[...]                                       # f32  [TB, Q, D]
    rel2 = rel.reshape(tb * q, d).astype(jnp.bfloat16)       # bf16 [TB*Q, D]

    # Fused projection of det_in through [W_det || W_val]  -> [TB*Q, 2F]
    dv = jnp.dot(det2, w_dv_ref[...],
                 preferred_element_type=jnp.float32) + b_dv_ref[...]
    det_attn = dv[:, :F].astype(jnp.bfloat16).reshape(tb, q, F)   # lane-aligned slice
    det_value = dv[:, F:].astype(jnp.bfloat16).reshape(tb, q, F)

    # rel projection; 1/sqrt(F) already folded into w_rel / b_rel.
    rel_attn = jnp.dot(rel2, w_rel_ref[...],
                       preferred_element_type=jnp.float32) + b_rel_ref[...]
    rel_attn = rel_attn.astype(jnp.bfloat16).reshape(tb, q, F)

    # scores^T[b, j, i] = <rel_attn[b, j], det_attn[b, i]>
    scores_t = jnp.einsum('bjf,bif->bji', rel_attn, det_attn,
                          preferred_element_type=jnp.float32)

    # Stable softmax over the det index (last axis).
    m = jnp.max(scores_t, axis=-1, keepdims=True)
    p = jnp.exp(scores_t - m)
    denom = jnp.sum(p, axis=-1, keepdims=True)
    det_weight = p * pl.reciprocal(denom, approx=True)

    rel_add = jnp.einsum('bji,bif->bjf', det_weight.astype(jnp.bfloat16),
                         det_value, preferred_element_type=jnp.float32)

    # Residual + LayerNorm(d_model), all in f32.
    x = rel_add + rel
    mu = jnp.mean(x, axis=-1, keepdims=True)
    xc = x - mu
    var = jnp.mean(xc * xc, axis=-1, keepdims=True)
    inv = lax.rsqrt(var + ln_eps)
    y = xc * inv * gamma_ref[...] + beta_ref[...]
    out_ref[...] = y.astype(out_ref.dtype)


# --------------------------------- wrapper ----------------------------------

def _pick_tb(B, Q, target_rows=256, max_rows=2048):
    """Largest useful batch tile: TB | B, TB*Q targets >= target_rows rows for
    the MXU, grid length stays >= 2 (v7x megacore), TB*Q bounded for VMEM."""
    divs = [t for t in range(1, B + 1) if B % t == 0]
    if B >= 2:                                   # keep >= 2 grid steps for v7x
        divs = [t for t in divs if B // t >= 2] or [1]
    divs = [t for t in divs if t * Q <= max_rows] or [divs[0]]
    for t in divs:                               # smallest tile hitting target
        if t * Q >= target_rows:
            return t
    return divs[-1]                              # otherwise largest feasible


def interaction_layer_fwd(det_in, rel_in, params, *, d_feature, ln_eps=1e-5):
    """Fused InteractionLayer forward. Returns (det_in, rel_out)."""
    B, Q, D = det_in.shape
    F = d_feature
    assert rel_in.shape == (B, Q, D)
    assert F == D, "residual rel_add + rel_in requires d_feature == d_model"
    assert F % 128 == 0, "fused [W_det||W_val] split must be 128-lane aligned"

    out_dtype = rel_in.dtype
    scale = 1.0 / math.sqrt(F)

    # Weight packing (host side, once per call; bf16 for MXU, biases stay f32).
    w_dv = jnp.concatenate([params["w_det"], params["w_val"]],
                           axis=1).astype(jnp.bfloat16)              # [D, 2F]
    b_dv = jnp.concatenate([params["b_det"], params["b_val"]],
                           axis=0).reshape(1, 2 * F).astype(jnp.float32)
    w_rel = (params["w_rel"] * scale).astype(jnp.bfloat16)           # [D, F]
    b_rel = (params["b_rel"] * scale).reshape(1, F).astype(jnp.float32)
    gamma = params["gamma"].reshape(1, D).astype(jnp.float32)
    beta = params["beta"].reshape(1, D).astype(jnp.float32)

    # det_in is only consumed as an MXU LHS -> ship in bf16 (half the DMA).
    det_bf = det_in.astype(jnp.bfloat16)
    rel_f32 = rel_in.astype(jnp.float32)

    TB = _pick_tb(B, Q)
    grid = (B // TB,)

    kernel = functools.partial(_interaction_kernel, F, ln_eps)

    rel_out = pl.pallas_call(
        kernel,
        out_shape=jax.ShapeDtypeStruct((B, Q, D), out_dtype),
        grid=grid,
        in_specs=[
            pl.BlockSpec((TB, Q, D), lambda b: (b, 0, 0)),      # det_in (bf16)
            pl.BlockSpec((TB, Q, D), lambda b: (b, 0, 0)),      # rel_in (f32)
            pl.BlockSpec((D, 2 * F), lambda b: (0, 0)),         # W_det||W_val (resident)
            pl.BlockSpec((1, 2 * F), lambda b: (0, 0)),         # b_det||b_val
            pl.BlockSpec((D, F), lambda b: (0, 0)),             # W_rel (scaled, resident)
            pl.BlockSpec((1, F), lambda b: (0, 0)),             # b_rel (scaled)
            pl.BlockSpec((1, D), lambda b: (0, 0)),             # LN gamma
            pl.BlockSpec((1, D), lambda b: (0, 0)),             # LN beta
        ],
        out_specs=pl.BlockSpec((TB, Q, D), lambda b: (b, 0, 0)),
        compiler_params=pltpu.CompilerParams(
            dimension_semantics=("parallel",),
            vmem_limit_bytes=48 * 1024 * 1024),
    )(det_bf, rel_f32, w_dv, b_dv, w_rel, b_rel, gamma, beta)

    # det branch is returned unchanged by the reference module.
    return det_in, rel_out


# ----------------------------- pure-JAX reference ---------------------------

def interaction_layer_ref(det_in, rel_in, params, *, d_feature, ln_eps=1e-5):
    bf = jnp.bfloat16
    F = d_feature

    def lin(x, w, b):
        return jnp.dot(x.astype(bf), w.astype(bf),
                       preferred_element_type=jnp.float32) + b

    det_attn = lin(det_in, params["w_det"], params["b_det"])
    rel_attn = lin(rel_in, params["w_rel"], params["b_rel"])
    det_value = lin(det_in, params["w_val"], params["b_val"])

    scores = jnp.einsum("bqf,bkf->bqk", det_attn.astype(bf), rel_attn.astype(bf),
                        preferred_element_type=jnp.float32) / math.sqrt(F)
    det_weight = jax.nn.softmax(jnp.swapaxes(scores, 1, 2), axis=-1)
    rel_add = jnp.einsum("bqk,bkf->bqf", det_weight.astype(bf),
                         det_value.astype(bf),
                         preferred_element_type=jnp.float32)
    x = rel_add + rel_in
    mu = jnp.mean(x, axis=-1, keepdims=True)
    var = jnp.mean((x - mu) ** 2, axis=-1, keepdims=True)
    y = (x - mu) * lax.rsqrt(var + ln_eps) * params["gamma"] + params["beta"]
    return det_in, y


# ----------------------------------- main -----------------------------------

if __name__ == "__main__":
    # Small shapes consistent with the module ([B, Q, d_model], d_model=256).
    # B=4, Q=32 exercises the multi-batch block path (TB=2) with grid=(2,).
    B, Q, D, F = 4, 32, 256, 256

    key = jax.random.PRNGKey(0)
    k = jax.random.split(key, 8)
    det_in = jax.random.normal(k[0], (B, Q, D), jnp.float32)
    rel_in = jax.random.normal(k[1], (B, Q, D), jnp.float32)

    def lin_init(kw, kb, d_in, d_out):
        bound = 1.0 / math.sqrt(d_in)
        w = jax.random.uniform(kw, (d_in, d_out), jnp.float32, -bound, bound)
        b = jax.random.uniform(kb, (d_out,), jnp.float32, -bound, bound)
        return w, b

    w_det, b_det = lin_init(k[2], k[3], D, F)
    w_rel, b_rel = lin_init(k[4], k[5], D, F)
    w_val, b_val = lin_init(k[6], k[7], D, F)
    params = dict(w_det=w_det, b_det=b_det,
                  w_rel=w_rel, b_rel=b_rel,
                  w_val=w_val, b_val=b_val,
                  gamma=jnp.ones((D,), jnp.float32),
                  beta=jnp.zeros((D,), jnp.float32))

    det_out, rel_out = interaction_layer_fwd(det_in, rel_in, params, d_feature=F)
    jax.block_until_ready(rel_out)

    # Correctness check against a pure-JAX reference (same bf16 matmul inputs).
    _, rel_ref_out = interaction_layer_ref(det_in, rel_in, params, d_feature=F)
    err = float(jnp.max(jnp.abs(rel_out - rel_ref_out)))
    if err > 5e-2:
        raise AssertionError(f"kernel/reference mismatch: max abs err = {err}")

    print("KERNEL_OK")
</pallas_src>

<mosaic_0001>
module attributes {stable_mosaic.version = 11 : i64} {
  func.func @_interaction_kernel(%arg0: i32, %arg1: memref<2x32x256xbf16, #tpu.memory_space<vmem>>, %arg2: memref<2x32x256xf32, #tpu.memory_space<vmem>>, %arg3: memref<256x512xbf16, #tpu.memory_space<vmem>>, %arg4: memref<1x512xf32, #tpu.memory_space<vmem>>, %arg5: memref<256x256xbf16, #tpu.memory_space<vmem>>, %arg6: memref<1x256xf32, #tpu.memory_space<vmem>>, %arg7: memref<1x256xf32, #tpu.memory_space<vmem>>, %arg8: memref<1x256xf32, #tpu.memory_space<vmem>>, %arg9: memref<2x32x256xf32, #tpu.memory_space<vmem>>) attributes {dimension_semantics = [#tpu.dimension_semantics<parallel>], iteration_bounds = array<i64: 2>, scalar_prefetch = 0 : i64, scratch_operands = 0 : i64, tpu.core_type = #tpu.core_type<tc>, window_params = [{transform_indices = @transform_0, window_bounds = array<i64: 2, 32, 256>}, {transform_indices = @transform_1, window_bounds = array<i64: 2, 32, 256>}, {pipeline_mode = #tpu.pipeline_mode<synchronous>, transform_indices = @transform_2, window_bounds = array<i64: 256, 512>}, {pipeline_mode = #tpu.pipeline_mode<synchronous>, transform_indices = @transform_3, window_bounds = array<i64: 1, 512>}, {pipeline_mode = #tpu.pipeline_mode<synchronous>, transform_indices = @transform_4, window_bounds = array<i64: 256, 256>}, {pipeline_mode = #tpu.pipeline_mode<synchronous>, transform_indices = @transform_5, window_bounds = array<i64: 1, 256>}, {pipeline_mode = #tpu.pipeline_mode<synchronous>, transform_indices = @transform_6, window_bounds = array<i64: 1, 256>}, {pipeline_mode = #tpu.pipeline_mode<synchronous>, transform_indices = @transform_7, window_bounds = array<i64: 1, 256>}, {transform_indices = @transform_8, window_bounds = array<i64: 2, 32, 256>}]} {
    %c0 = arith.constant 0 : index
    %c0_0 = arith.constant 0 : index
    %c0_1 = arith.constant 0 : index
    %0 = vector.load %arg1[%c0, %c0_0, %c0_1] : memref<2x32x256xbf16, #tpu.memory_space<vmem>>, vector<2x32x256xbf16>
    %1 = vector.shape_cast %0 : vector<2x32x256xbf16> to vector<64x256xbf16>
    %c0_2 = arith.constant 0 : index
    %c0_3 = arith.constant 0 : index
    %c0_4 = arith.constant 0 : index
    %2 = vector.load %arg2[%c0_2, %c0_3, %c0_4] : memref<2x32x256xf32, #tpu.memory_space<vmem>>, vector<2x32x256xf32>
    %3 = vector.shape_cast %2 : vector<2x32x256xf32> to vector<64x256xf32>
    %4 = arith.truncf %3 : vector<64x256xf32> to vector<64x256xbf16>
    %c0_5 = arith.constant 0 : index
    %c0_6 = arith.constant 0 : index
    %5 = vector.load %arg3[%c0_5, %c0_6] : memref<256x512xbf16, #tpu.memory_space<vmem>>, vector<256x512xbf16>
    %cst = arith.constant dense<0.000000e+00> : vector<64x512xf32>
    %6 = tpu.matmul %1, %5, %cst {dimension_numbers = #tpu.dot_dimension_numbers<[1], [0], [0], [1], [0, 0, 1, 1], [], []>} : vector<64x256xbf16>, vector<256x512xbf16>, vector<64x512xf32> -> vector<64x512xf32>
    %c0_7 = arith.constant 0 : index
    %c0_8 = arith.constant 0 : index
    %7 = vector.load %arg4[%c0_7, %c0_8] : memref<1x512xf32, #tpu.memory_space<vmem>>, vector<1x512xf32>
    %8 = vector.broadcast %7 : vector<1x512xf32> to vector<64x512xf32>
    %9 = arith.addf %6, %8 : vector<64x512xf32>
    %10 = vector.extract_strided_slice %9 {offsets = [0, 0], sizes = [64, 256], strides = [1, 1]} : vector<64x512xf32> to vector<64x256xf32>
    %11 = arith.truncf %10 : vector<64x256xf32> to vector<64x256xbf16>
    %12 = vector.shape_cast %11 : vector<64x256xbf16> to vector<2x32x256xbf16>
    %13 = vector.extract_strided_slice %9 {offsets = [0, 256], sizes = [64, 256], strides = [1, 1]} : vector<64x512xf32> to vector<64x256xf32>
    %14 = arith.truncf %13 : vector<64x256xf32> to vector<64x256xbf16>
    %15 = vector.shape_cast %14 : vector<64x256xbf16> to vector<2x32x256xbf16>
    %c0_9 = arith.constant 0 : index
    %c0_10 = arith.constant 0 : index
    %16 = vector.load %arg5[%c0_9, %c0_10] : memref<256x256xbf16, #tpu.memory_space<vmem>>, vector<256x256xbf16>
    %cst_11 = arith.constant dense<0.000000e+00> : vector<64x256xf32>
    %17 = tpu.matmul %4, %16, %cst_11 {dimension_numbers = #tpu.dot_dimension_numbers<[1], [0], [0], [1], [0, 0, 1, 1], [], []>} : vector<64x256xbf16>, vector<256x256xbf16>, vector<64x256xf32> -> vector<64x256xf32>
    %c0_12 = arith.constant 0 : index
    %c0_13 = arith.constant 0 : index
    %18 = vector.load %arg6[%c0_12, %c0_13] : memref<1x256xf32, #tpu.memory_space<vmem>>, vector<1x256xf32>
    %19 = vector.broadcast %18 : vector<1x256xf32> to vector<64x256xf32>
    %20 = arith.addf %17, %19 : vector<64x256xf32>
    %21 = arith.truncf %20 : vector<64x256xf32> to vector<64x256xbf16>
    %22 = vector.shape_cast %21 : vector<64x256xbf16> to vector<2x32x256xbf16>
    "tpu.trace_start"() <{level = 10 : i32, message = "bjf,bif->bji"}> : () -> ()
    %cst_14 = arith.constant dense<0.000000e+00> : vector<2x32x32xf32>
    %23 = tpu.matmul %22, %12, %cst_14 {dimension_numbers = #tpu.dot_dimension_numbers<[2], [2], [1], [1], [0, 0, 0, 1, 1, 1], [0], [0]>} : vector<2x32x256xbf16>, vector<2x32x256xbf16>, vector<2x32x32xf32> -> vector<2x32x32xf32>
    "tpu.trace_stop"() : () -> ()
    %cst_15 = arith.constant dense<0xFF800000> : vector<2x32xf32>
    %24 = vector.multi_reduction <maximumf>, %23, %cst_15 [2] : vector<2x32x32xf32> to vector<2x32xf32>
    %25 = vector.shape_cast %24 : vector<2x32xf32> to vector<2x32x1xf32>
    %26 = vector.broadcast %25 : vector<2x32x1xf32> to vector<2x32x32xf32>
    %27 = arith.subf %23, %26 : vector<2x32x32xf32>
    %28 = math.exp %27 : vector<2x32x32xf32>
    %cst_16 = arith.constant dense<0.000000e+00> : vector<2x32xf32>
    %29 = vector.multi_reduction <add>, %28, %cst_16 [2] : vector<2x32x32xf32> to vector<2x32xf32>
    %30 = vector.shape_cast %29 : vector<2x32xf32> to vector<2x32x1xf32>
    %31 = tpu.reciprocal %30 {approx = true} : vector<2x32x1xf32> -> vector<2x32x1xf32>
    %32 = vector.broadcast %31 : vector<2x32x1xf32> to vector<2x32x32xf32>
    %33 = arith.mulf %28, %32 : vector<2x32x32xf32>
    %34 = arith.truncf %33 : vector<2x32x32xf32> to vector<2x32x32xbf16>
    "tpu.trace_start"() <{level = 10 : i32, message = "bji,bif->bjf"}> : () -> ()
    %cst_17 = arith.constant dense<0.000000e+00> : vector<2x32x256xf32>
    %35 = tpu.matmul %34, %15, %cst_17 {dimension_numbers = #tpu.dot_dimension_numbers<[2], [1], [1], [2], [0, 0, 0, 1, 1, 2], [0], [0]>} : vector<2x32x32xbf16>, vector<2x32x256xbf16>, vector<2x32x256xf32> -> vector<2x32x256xf32>
    "tpu.trace_stop"() : () -> ()
    %36 = arith.addf %35, %2 : vector<2x32x256xf32>
    %cst_18 = arith.constant dense<0.000000e+00> : vector<2x32xf32>
    %37 = vector.multi_reduction <add>, %36, %cst_18 [2] : vector<2x32x256xf32> to vector<2x32xf32>
    %38 = vector.shape_cast %37 : vector<2x32xf32> to vector<2x32x1xf32>
    %cst_19 = arith.constant 2.560000e+02 : f32
    %39 = vector.broadcast %cst_19 : f32 to vector<2x32x1xf32>
    %40 = arith.divf %38, %39 : vector<2x32x1xf32>
    %41 = vector.broadcast %40 : vector<2x32x1xf32> to vector<2x32x256xf32>
    %42 = arith.subf %36, %41 : vector<2x32x256xf32>
    %43 = arith.mulf %42, %42 : vector<2x32x256xf32>
    %cst_20 = arith.constant dense<0.000000e+00> : vector<2x32xf32>
    %44 = vector.multi_reduction <add>, %43, %cst_20 [2] : vector<2x32x256xf32> to vector<2x32xf32>
    %45 = vector.shape_cast %44 : vector<2x32xf32> to vector<2x32x1xf32>
    %cst_21 = arith.constant 2.560000e+02 : f32
    %46 = vector.broadcast %cst_21 : f32 to vector<2x32x1xf32>
    %47 = arith.divf %45, %46 : vector<2x32x1xf32>
    %cst_22 = arith.constant 9.99999974E-6 : f32
    %48 = vector.broadcast %cst_22 : f32 to vector<2x32x1xf32>
    %49 = arith.addf %47, %48 : vector<2x32x1xf32>
    %50 = math.rsqrt %49 : vector<2x32x1xf32>
    %51 = vector.broadcast %50 : vector<2x32x1xf32> to vector<2x32x256xf32>
    %52 = arith.mulf %42, %51 : vector<2x32x256xf32>
    %c0_23 = arith.constant 0 : index
    %c0_24 = arith.constant 0 : index
    %53 = vector.load %arg7[%c0_23, %c0_24] : memref<1x256xf32, #tpu.memory_space<vmem>>, vector<1x256xf32>
    %54 = vector.shape_cast %53 : vector<1x256xf32> to vector<1x1x256xf32>
    %55 = vector.broadcast %54 : vector<1x1x256xf32> to vector<2x32x256xf32>
    %56 = arith.mulf %52, %55 : vector<2x32x256xf32>
    %c0_25 = arith.constant 0 : index
    %c0_26 = arith.constant 0 : index
    %57 = vector.load %arg8[%c0_25, %c0_26] : memref<1x256xf32, #tpu.memory_space<vmem>>, vector<1x256xf32>
    %58 = vector.shape_cast %57 : vector<1x256xf32> to vector<1x1x256xf32>
    %59 = vector.broadcast %58 : vector<1x1x256xf32> to vector<2x32x256xf32>
    %60 = arith.addf %56, %59 : vector<2x32x256xf32>
    %c0_27 = arith.constant 0 : index
    %c0_28 = arith.constant 0 : index
    %c0_29 = arith.constant 0 : index
    %61 = vector.load %arg9[%c0_27, %c0_28, %c0_29] : memref<2x32x256xf32, #tpu.memory_space<vmem>>, vector<2x32x256xf32>
    tpu.vector_store %arg9[%c0_27, %c0_28, %c0_29], %60 {strides = array<i32>} : memref<2x32x256xf32, #tpu.memory_space<vmem>>, vector<2x32x256xf32>,
    return
  }
  func.func @transform_0(%arg0: i32) -> (i32, i32, i32) {
    %c0_i32 = arith.constant 0 : i32
    %c0_i32_0 = arith.constant 0 : i32
    %c0_i32_1 = arith.constant 0 : i32
    return %arg0, %c0_i32, %c0_i32_0 : i32, i32, i32
  }
  func.func @transform_1(%arg0: i32) -> (i32, i32, i32) {
    %c0_i32 = arith.constant 0 : i32
    %c0_i32_0 = arith.constant 0 : i32
    %c0_i32_1 = arith.constant 0 : i32
    return %arg0, %c0_i32, %c0_i32_0 : i32, i32, i32
  }
  func.func @transform_2(%arg0: i32) -> (i32, i32) {
    %c0_i32 = arith.constant 0 : i32
    %c0_i32_0 = arith.constant 0 : i32
    %c0_i32_1 = arith.constant 0 : i32
    return %c0_i32, %c0_i32_0 : i32, i32
  }
  func.func @transform_3(%arg0: i32) -> (i32, i32) {
    %c0_i32 = arith.constant 0 : i32
    %c0_i32_0 = arith.constant 0 : i32
    %c0_i32_1 = arith.constant 0 : i32
    return %c0_i32, %c0_i32_0 : i32, i32
  }
  func.func @transform_4(%arg0: i32) -> (i32, i32) {
    %c0_i32 = arith.constant 0 : i32
    %c0_i32_0 = arith.constant 0 : i32
    %c0_i32_1 = arith.constant 0 : i32
    return %c0_i32, %c0_i32_0 : i32, i32
  }
  func.func @transform_5(%arg0: i32) -> (i32, i32) {
    %c0_i32 = arith.constant 0 : i32
    %c0_i32_0 = arith.constant 0 : i32
    %c0_i32_1 = arith.constant 0 : i32
    return %c0_i32, %c0_i32_0 : i32, i32
  }
  func.func @transform_6(%arg0: i32) -> (i32, i32) {
    %c0_i32 = arith.constant 0 : i32
    %c0_i32_0 = arith.constant 0 : i32
    %c0_i32_1 = arith.constant 0 : i32
    return %c0_i32, %c0_i32_0 : i32, i32
  }
  func.func @transform_7(%arg0: i32) -> (i32, i32) {
    %c0_i32 = arith.constant 0 : i32
    %c0_i32_0 = arith.constant 0 : i32
    %c0_i32_1 = arith.constant 0 : i32
    return %c0_i32, %c0_i32_0 : i32, i32
  }
  func.func @transform_8(%arg0: i32) -> (i32, i32, i32) {
    %c0_i32 = arith.constant 0 : i32
    %c0_i32_0 = arith.constant 0 : i32
    %c0_i32_1 = arith.constant 0 : i32
    return %arg0, %c0_i32, %c0_i32_0 : i32, i32, i32
  }
}

</mosaic_0001>

<bundles_post_ra>
// kernel: tpu_custom_call.1
= control target key start
LH: loop header
LB: loop body
LE: loop exit
PB: predicated region body
PF: predicated region fallthrough
CT: control target
= control target key end

     0   :  { %s3936_s0 = inlined_call_operand.hbm [shape: bf16[4,32,256], index: 0, kind: input, shape index: {}]   ;;  %s3937_s1 = inlined_call_operand.hbm [shape: f32[4,32,256], index: 1, kind: input, shape index: {}]   ;;  %s3938_s2 = inlined_call_operand.hbm [shape: bf16[256,512], index: 2, kind: input, shape index: {}]   ;;  %s3939_s3 = inlined_call_operand.hbm [shape: f32[1,512], index: 3, kind: input, shape index: {}]   ;;  %s3940_s4 = inlined_call_operand.hbm [shape: bf16[256,256], index: 4, kind: input, shape index: {}]   ;;  %s3941_s5 = inlined_call_operand.vmem [shape: f32[1,256], index: 5, kind: input, shape index: {}]   ;;  %s3942_s6 = inlined_call_operand.vmem [shape: f32[1,256], index: 6, kind: input, shape index: {}]   ;;  %s3943_s7 = inlined_call_operand.vmem [shape: f32[1,256], index: 7, kind: input, shape index: {}]   ;;  %s3944_s8 = inlined_call_operand.hbm [shape: f32[4,32,256], index: 8, kind: output, shape index: {}]  }
   0x1   :  { %3953 = sst [smem:[#allocation21_spill]] %s3938_s2 }
   0x2   :  { %3954 = sst [smem:[#allocation22_spill]] %s3939_s3 }
   0x3   :  { %3955 = sst [smem:[#allocation23_spill]] %s3940_s4 }
   0x4   :  { %13 = vsyncpa [#allocation3], 0 }
   0x5   :  { %15 = vsyncpa [#allocation3 + $0x1], 0 }
   0x6   :  { %16 = vsyncpa [#allocation6], 0 }
   0x7   :  { %18 = vsyncpa [#allocation6 + $0x1], 0 }
   0x8   :  { %19 = vsyncpa [#allocation9], 0 }
   0x9   :  { %20 = vsyncpa [#allocation4], 0 }
   0xa   :  { %22 = vsyncpa [#allocation4 + $0x1], 0  ;;  %s3259_s27 = smov 0   ;;  %s3261_s28 = smov 0  }
   0xb   :  { %s3263_s29 = smov 0   ;;  %s3265_s30 = smov 0  }
   0xc LB: > { %3956 = sst [smem:[#allocation17_spill]] %s3198_s29  ;;  %s3280_s9 = sadd.s32 4294967295, %s3202_s30   ;;  %s3202_s30 = sphi %s3265_s30, %s3975_s30   ;;  %s3198_s29 = sphi %s3263_s29, %s3977_s29   ;;  %s3194_s28 = sphi %s3261_s28, %s3979_s28   ;;  %s3190_s27 = sphi %s3259_s27, %s3978_s27  }
   0xd   : > { %s2266_s10 = sadd.s32 4294967294, %s3202_s30   ;;  %p48_p0 = scmp.ne.s32.totalorder %s3194_s28, %s3190_s27 }
   0xe   : > { %p49_p1 = scmp.eq.s32.totalorder %s3280_s9, 0  ;;  %p224_p2 = scmp.eq.s32.totalorder %s3280_s9, 1 }
   0xf   : > { %p230_p3 = scmp.eq.s32.totalorder %s2266_s10, 1  ;;  %p2267_p5 = scmp.ge.s32.totalorder %s3202_s30, 1 }
  0x10   : > { %p3289_p4 = por %p49_p1, %p48_p0  ;;  %p237_p7 = scmp.lt.s32.totalorder %s3202_s30, 3 }
  0x11   : > { %p3294_p6 = por %p230_p3, %p48_p0  ;;  %s3960_s2 = sld [smem:[#allocation21_spill]] }
  0x12   : > { %p3302_p8 = pnand %p2267_p5, %p237_p7  ;;  %s3204_s17 = smov [#allocation7]  }
  0x13   : > { %s3958_s12 = scalar_select %p3294_p6, 1, 0 }
  0x14   : > { %p2845_p9 = pneg %p3302_p8  ;;  %s250_s18 = sshll.u32 %s3204_s17, 4  ;;  %s251_s18 = int_to_ptr.vmem [resolvable:$true] %s250_s18 }
  0x15   : > { %3959 = sst [smem:[#allocation18_spill]] %s3958_s12  ;;  %s3945_s23 = smov 256  }
  0x16   : > { %p3310_p10 = pnand %p2845_p9, %p49_p1  ;;  %s3963_s3 = sld [smem:[#allocation22_spill]] }
  0x17   : > { %s248_s15 = sshll.u32 %s3960_s2, 4  ;;  %s3946_s24 = smov 16   ;;  %s249_s15 = int_to_ptr.hbm [resolvable:$true] %s248_s15 }
  0x18   : > { %2848 = dma.hbm_to_vmem [thread:$0]  (!%p3310_p10), %s249_s15, 8192, %s251_s18, [#allocation6], %s3945_s23, %s3945_s23, %s3946_s24  }
  0x19   : > { %s3207_s25 = smov [#allocation8]   ;;  %s3964_s4 = sld [smem:[#allocation23_spill]] }
  0x1a   : > { %s265_s26 = sshll.u32 %s3207_s25, 4  ;;  %s3208_s17 = smov [#allocation10]   ;;  %s266_s26 = int_to_ptr.vmem [resolvable:$true] %s265_s26 }
  0x1b   : > { %s276_s20 = sshll.u32 %s3208_s17, 4  ;;  %s3947_s15 = smov 128   ;;  %s277_s20 = int_to_ptr.vmem [resolvable:$true] %s276_s20 }
  0x1c   : > { %s263_s22 = sshll.u32 %s3963_s3, 4  ;;  %s3948_s18 = smov 8   ;;  %s264_s22 = int_to_ptr.hbm [resolvable:$true] %s263_s22 }
  0x1d   : > { %2851 = dma.hbm_to_vmem [thread:$0]  (!%p3310_p10), %s264_s22, 64, %s266_s26, [#allocation9]  }
  0x1e   : > { %s3334_s21 = sadd.s32 1, %s3202_s30   ;;  %s35_s10 = sadd.s32 1, %s3198_s29 }
  0x1f   : > { %s274_s14 = sshll.u32 %s3964_s4, 4  ;;  %3965 = sst [smem:[#allocation19_spill]] %s3334_s21  ;;  %s275_s14 = int_to_ptr.hbm [resolvable:$true] %s274_s14 }
  0x20   : > { %2854 = dma.hbm_to_vmem [thread:$0]  (!%p3310_p10), %s275_s14, 4096, %s277_s20, [#allocation9], %s3947_s15, %s3947_s15, %s3948_s18  }
  0x21   : > { %s32_s25 = ssub.s32 %s3202_s30, %s3334_s21  ;;  %p42_p13 = scmp.ne.s32.totalorder %s3198_s29, %s3194_s28 }
  0x22   : > { %p33_p12 = scmp.eq.s32.totalorder %s32_s25, 0  ;;  %p43_p0 = scmp.eq.s32.totalorder %s3202_s30, 0 }
  0x23   : > { %p2869_p3 = scmp.lt.s32.totalorder %s3202_s30, 2  ;;  %p3348_p7 = por %p224_p2, %p42_p13 }
  0x24   : > { %s3344_s22 = scalar_select %p33_p12, %s3198_s29, %s35_s10  }
  0x25   : > { %p44_p5 = por %p43_p0, %p42_p13  ;;  %s3353_s26 = sand.u32 1, %s3198_s29  }
  0x26   : > { %3966 = sst [smem:[#allocation20_spill]] %s3344_s22  ;;  %s2718_s13 = sshll.u32 %s3202_s30, 6 }
  0x27   : > { %s2272_s14 = sshll.u32 %s3353_s26, 6  ;;  %s309_s25 = scalar_lea.hbm %s3936_s0, %s2718_s13 }
  0x28   : > { %s310_s23 = sshll.u32 %s309_s25, 4  ;;  %s303_s10 = scalar_lea.vmem [#allocation2], %s2272_s14  ;;  %s311_s23 = int_to_ptr.hbm [resolvable:$true] %s310_s23 }
  0x29   : > { %s312_s24 = sshll.u32 %s303_s10, 4  ;;  %p3362_p2 = pnand %p2869_p3, %p44_p5  ;;  %s313_s24 = int_to_ptr.vmem [resolvable:$true] %s312_s24 }
  0x2a   : > { %s322_s18 = sand.u32 1, %s3202_s30   ;;  %s2276_s2 = sshll.u32 %s3353_s26, 7 }
  0x2b   : > { %s300_s3 = scalar_lea.sflag [#allocation3], %s3353_s26  ;;  %s3064_s4 = sshra.s32 %s311_s23, 4  ;;  %s3065_s4 = int_to_ptr.hbm [resolvable:$true] %s3064_s4 }
  0x2c   : > { %s3066_s22 = scalar_lea.hbm %s3065_s4, 64  ;;  %p3068_p10 = pneg %p3362_p2 }
  0x2d   : > { %p3067_p9 = scmp.ne.s32.totalorder %s3065_s4, %s3066_s22  ;;  %s3071_s17 = scalar_lea.hbm %s3936_s0, 128 }
  0x2e   : > { %p3072_p0 = scmp.lt.s32.totalorder %s3065_s4, %s3936_s0  ;;  %p3073_p3 = scmp.lt.s32.totalorder %s3071_s17, %s3066_s22 }
  0x2f   : > { %p3069_p12 = pnand %p3068_p10, %p3067_p9 }
  0x30   : > { %p3074_p5 = por %p3073_p3, %p3072_p0 }
  0x31   : > { %p3070_p13 = pneg %p3069_p12 }
  0x33   : > { %p3075_p11 = pnand %p3074_p5, %p3070_p13 }
  0x35   : > { %3078 = shalt.err (!%p3075_p11)
}
  0x36   : > { %s3969_s26 = smov 8   ;;  %s3970_s10 = smov 128  }
  0x37   : > { %2858 = dma.hbm_to_vmem [thread:$0]  (!%p3362_p2), %s311_s23, 1024, %s313_s24, %s300_s3, %s3970_s10, %s3970_s10, %s3969_s26  }
  0x38   : > { %s2720_s29 = sshll.u32 %s3202_s30, 7  ;;  %s326_s21 = scalar_lea.vmem [#allocation5], %s2276_s2 }
  0x39   : > { %s335_s13 = sshll.u32 %s326_s21, 4  ;;  %s332_s20 = scalar_lea.hbm %s3937_s1, %s2720_s29  ;;  %s336_s13 = int_to_ptr.vmem [resolvable:$true] %s335_s13 }
  0x3a   : > { %s333_s4 = sshll.u32 %s332_s20, 4  ;;  %s323_s22 = scalar_lea.sflag [#allocation6], %s322_s18  ;;  %s334_s4 = int_to_ptr.hbm [resolvable:$true] %s333_s4 }
  0x3b   : > { %s3094_s17 = sshra.s32 %s334_s4, 4  ;;  %s3101_s2 = scalar_lea.hbm %s3937_s1, 256  ;;  %s3095_s17 = int_to_ptr.hbm [resolvable:$true] %s3094_s17 }
  0x3c   : > { %s3096_s25 = scalar_lea.hbm %s3095_s17, 128  ;;  %p3102_p13 = scmp.lt.s32.totalorder %s3095_s17, %s3937_s1 }
  0x3d   : > { %p3097_p11 = scmp.ne.s32.totalorder %s3095_s17, %s3096_s25  ;;  %p3103_p0 = scmp.lt.s32.totalorder %s3101_s2, %s3096_s25 }
  0x3f   : > { %p3099_p9 = pnand %p3097_p11, %p3068_p10  ;;  %p3104_p3 = por %p3103_p0, %p3102_p13 }
  0x41   : > { %p3100_p12 = pneg %p3099_p9 }
  0x43   : > { %p3105_p5 = pnand %p3104_p3, %p3100_p12 }
  0x45   : > { %3108 = shalt.err (!%p3105_p5)
}
  0x46   : > { %s3971_s29 = smov 16   ;;  %s3972_s12 = smov 256  }
  0x47   : > { %2861 = dma.hbm_to_vmem [thread:$0]  (!%p3362_p2), %s334_s4, 2048, %s336_s13, %s323_s22, %s3972_s12, %s3972_s12, %s3971_s29  }
  0x48   : > { %347 = sbr.rel (%p3302_p8) target bundleno = 1269 (0x4f5), region = 52  ;;  %s3406_s18 = sand.u32 (!%p3302_p8), 1, %s3194_s28  }
  0x49   : > { %s2281_s26 = sshll.u32 (!%p3302_p8), %s3406_s18, 6  ;;  %s350_s10 = scalar_lea.sflag (!%p3302_p8), [#allocation3], %s3406_s18 }
  0x4a   : > { %s3410_s14 = scalar_lea.vmem (!%p3302_p8), [#allocation2], %s2281_s26 }
  0x4d   : > { %3169 = dma.done.wait (%p3289_p4), %s350_s10, 1024  }
  0x4e   : > { %3171 = vsyncadd (%p3289_p4), %s350_s10, 4294966272  ;;  %s359_s16 = sand.u32 1, %s3280_s9   ;;  %s2282_s15 = sshll.u32 %s3406_s18, 7 }
  0x4f   : > { %s360_s13 = scalar_lea.sflag [#allocation6], %s359_s16  ;;  %s3420_s20 = scalar_lea.vmem [#allocation5], %s2282_s15 }
  0x50   : > { %3173 = dma.done.wait (%p3289_p4), %s360_s13, 2048  }
  0x51   : > { %3175 = vsyncadd (%p3289_p4), %s360_s13, 4294965248 }
  0x52   : > { %3177 = dma.done.wait (%p49_p1), [#allocation6], 8192  }
  0x53   : > { %3179 = vsyncadd (%p49_p1), [#allocation6], 4294959104 }
  0x54   : > { %3181 = dma.done.wait (%p49_p1), [#allocation9], 4160  }
  0x55   : > { %3183 = vsyncadd (%p49_p1), [#allocation9], 4294963136  ;;  %v2433_v0 = vld [vmem:[#allocation7 + $0xe0] sm:$0xf]  ;;  %v2759_v1 = vld [vmem:[#allocation7 + $0xec] sm:$0xf0] }
  0x56   : > { %v2561_v2 = vld [vmem:[#allocation7 + $0x1e0] sm:$0xf]  ;;  %v2434_v3 = vor.u32 %v2759_v1, %v2433_v0  ;;  %v2791_v4 = vld [vmem:[#allocation7 + $0x1ec] sm:$0xf0]  ;;  %v2757_v5 = vld [vmem:[#allocation7 + $0xe4] sm:$0xf] }
  0x57   : > { %v2435_v6 = vld [vmem:[#allocation7 + $0xf0] sm:$0xf0]  ;;  %v2562_v7 = vor.u32 %v2791_v4, %v2561_v2  ;;  %v2789_v9 = vld [vmem:[#allocation7 + $0x1e4] sm:$0xf]  ;;  %v2417_v11 = vld [vmem:[#allocation7 + $0xc0] sm:$0xf] }
  0x58   : > { %v2438_v8 = vor.u32 %v2757_v5, %v2435_v6  ;;  %v2563_v10 = vld [vmem:[#allocation7 + $0x1f0] sm:$0xf0]  ;;  %887 = vmatpush.bf16.msra.mxu0 %v2434_v3  ;;  %v2755_v13 = vld [vmem:[#allocation7 + $0xcc] sm:$0xf0]  ;;  %v2545_v14 = vld [vmem:[#allocation7 + $0x1c0] sm:$0xf] }
  0x59   : > { %v2566_v12 = vor.u32 %v2789_v9, %v2563_v10  ;;  %v2787_v15 = vld [vmem:[#allocation7 + $0x1cc] sm:$0xf0]  ;;  %916 = vmatpush.bf16.msra.mxu1 %v2562_v7  ;;  %v2418_v16 = vor.u32 %v2755_v13, %v2417_v11  ;;  %v2753_v18 = vld [vmem:[#allocation7 + $0xc4] sm:$0xf]  ;;  %v2419_v19 = vld [vmem:[#allocation7 + $0xd0] sm:$0xf0] }
  0x5a   : > { %945 = vmatpush.bf16.msra.mxu2 %v2438_v8  ;;  %v2546_v17 = vor.u32 %v2787_v15, %v2545_v14  ;;  %v2785_v20 = vld [vmem:[#allocation7 + $0x1c4] sm:$0xf]  ;;  %v2422_v21 = vor.u32 %v2753_v18, %v2419_v19  ;;  %v2547_v22 = vld [vmem:[#allocation7 + $0x1d0] sm:$0xf0]  ;;  %v2401_v23 = vld [vmem:[#allocation7 + $0xa0] sm:$0xf] }
  0x5b   : > { %974 = vmatpush.bf16.msra.mxu3 %v2566_v12  ;;  %v2751_v24 = vld [vmem:[#allocation7 + $0xac] sm:$0xf0]  ;;  %v2550_v25 = vor.u32 %v2785_v20, %v2547_v22  ;;  %v2529_v26 = vld [vmem:[#allocation7 + $0x1a0] sm:$0xf]  ;;  %v2749_v28 = vld [vmem:[#allocation7 + $0xa4] sm:$0xf] }
  0x5c   : > { %v2783_v27 = vld [vmem:[#allocation7 + $0x1ac] sm:$0xf0]  ;;  %888 = vmatpush.bf16.msra.mxu0 %v2418_v16  ;;  %v2402_v29 = vor.u32 %v2751_v24, %v2401_v23  ;;  %v2403_v30 = vld [vmem:[#allocation7 + $0xb0] sm:$0xf0]  ;;  %v2781_v31 = vld [vmem:[#allocation7 + $0x1a4] sm:$0xf] }
  0x5d   : > { %v2531_v32 = vld [vmem:[#allocation7 + $0x1b0] sm:$0xf0]  ;;  %917 = vmatpush.bf16.msra.mxu1 %v2546_v17  ;;  %v2530_v33 = vor.u32 %v2783_v27, %v2529_v26  ;;  %v2406_v34 = vor.u32 %v2749_v28, %v2403_v30  ;;  %v2385_v35 = vld [vmem:[#allocation7 + $0x80] sm:$0xf]  ;;  %v2747_v36 = vld [vmem:[#allocation7 + $0x8c] sm:$0xf0] }
  0x5e   : > { %946 = vmatpush.bf16.msra.mxu2 %v2422_v21  ;;  %v2513_v37 = vld [vmem:[#allocation7 + $0x180] sm:$0xf]  ;;  %v2534_v38 = vor.u32 %v2781_v31, %v2531_v32  ;;  %v2779_v39 = vld [vmem:[#allocation7 + $0x18c] sm:$0xf0]  ;;  %v2745_v40 = vld [vmem:[#allocation7 + $0x84] sm:$0xf]  ;;  %v2386_v44 = vor.u32 %v2747_v36, %v2385_v35 }
  0x5f   : > { %975 = vmatpush.bf16.msra.mxu3 %v2550_v25  ;;  %v2387_v41 = vld [vmem:[#allocation7 + $0x90] sm:$0xf0]  ;;  %v2777_v42 = vld [vmem:[#allocation7 + $0x184] sm:$0xf]  ;;  %v2514_v45 = vor.u32 %v2779_v39, %v2513_v37  ;;  %v2369_v47 = vld [vmem:[#allocation7 + $0x60] sm:$0xf] }
  0x60   : > { %v2515_v43 = vld [vmem:[#allocation7 + $0x190] sm:$0xf0]  ;;  %889 = vmatpush.bf16.msra.mxu0 %v2402_v29  ;;  %v2390_v46 = vor.u32 %v2745_v40, %v2387_v41  ;;  %v2743_v48 = vld [vmem:[#allocation7 + $0x6c] sm:$0xf0]  ;;  %v2497_v49 = vld [vmem:[#allocation7 + $0x160] sm:$0xf] }
  0x61   : > { %918 = vmatpush.bf16.msra.mxu1 %v2530_v33  ;;  %v2518_v50 = vor.u32 %v2777_v42, %v2515_v43  ;;  %v2775_v51 = vld [vmem:[#allocation7 + $0x16c] sm:$0xf0]  ;;  %v2741_v52 = vld [vmem:[#allocation7 + $0x64] sm:$0xf]  ;;  %v2371_v53 = vld [vmem:[#allocation7 + $0x70] sm:$0xf0]  ;;  %v2370_v56 = vor.u32 %v2743_v48, %v2369_v47 }
  0x62   : > { %947 = vmatpush.bf16.msra.mxu2 %v2406_v34  ;;  %v2773_v54 = vld [vmem:[#allocation7 + $0x164] sm:$0xf]  ;;  %v2499_v55 = vld [vmem:[#allocation7 + $0x170] sm:$0xf0]  ;;  %v2498_v57 = vor.u32 %v2775_v51, %v2497_v49  ;;  %v2374_v58 = vor.u32 %v2741_v52, %v2371_v53  ;;  %v2353_v59 = vld [vmem:[#allocation7 + $0x40] sm:$0xf] }
  0x63   : > { %976 = vmatpush.bf16.msra.mxu3 %v2534_v38  ;;  %v2739_v60 = vld [vmem:[#allocation7 + $0x4c] sm:$0xf0]  ;;  %v2481_v61 = vld [vmem:[#allocation7 + $0x140] sm:$0xf]  ;;  %v2502_v62 = vor.u32 %v2773_v54, %v2499_v55  ;;  %v2737_v0 = vld [vmem:[#allocation7 + $0x44] sm:$0xf] }
  0x64   : > { %890 = vmatpush.bf16.msra.mxu0 %v2386_v44  ;;  %v2771_v63 = vld [vmem:[#allocation7 + $0x14c] sm:$0xf0]  ;;  %v2355_v1 = vld [vmem:[#allocation7 + $0x50] sm:$0xf0]  ;;  %v2769_v2 = vld [vmem:[#allocation7 + $0x144] sm:$0xf]  ;;  %v2354_v4 = vor.u32 %v2739_v60, %v2353_v59 }
  0x65   : > { %919 = vmatpush.bf16.msra.mxu1 %v2514_v45  ;;  %v2483_v3 = vld [vmem:[#allocation7 + $0x150] sm:$0xf0]  ;;  %v2482_v5 = vor.u32 %v2771_v63, %v2481_v61  ;;  %v2358_v6 = vor.u32 %v2737_v0, %v2355_v1  ;;  %v2337_v7 = vld [vmem:[#allocation7 + $0x20] sm:$0xf]  ;;  %v2735_v8 = vld [vmem:[#allocation7 + $0x2c] sm:$0xf0] }
  0x66   : > { %948 = vmatpush.bf16.msra.mxu2 %v2390_v46  ;;  %v2465_v9 = vld [vmem:[#allocation7 + $0x120] sm:$0xf]  ;;  %v2486_v10 = vor.u32 %v2769_v2, %v2483_v3  ;;  %v2767_v11 = vld [vmem:[#allocation7 + $0x12c] sm:$0xf0]  ;;  %v2733_v12 = vld [vmem:[#allocation7 + $0x24] sm:$0xf]  ;;  %v2338_v16 = vor.u32 %v2735_v8, %v2337_v7 }
  0x67   : > { %977 = vmatpush.bf16.msra.mxu3 %v2518_v50  ;;  %v2339_v13 = vld [vmem:[#allocation7 + $0x30] sm:$0xf0]  ;;  %v2765_v14 = vld [vmem:[#allocation7 + $0x124] sm:$0xf]  ;;  %v2321_v17 = vld [vmem:[#allocation7] sm:$0xf]  ;;  %v2466_v19 = vor.u32 %v2767_v11, %v2465_v9 }
  0x68   : > { %891 = vmatpush.bf16.msra.mxu0 %v2370_v56  ;;  %v2467_v15 = vld [vmem:[#allocation7 + $0x130] sm:$0xf0]  ;;  %v2731_v18 = vld [vmem:[#allocation7 + $0xc] sm:$0xf0]  ;;  %v2342_v20 = vor.u32 %v2733_v12, %v2339_v13  ;;  %v2449_v21 = vld [vmem:[#allocation7 + $0x100] sm:$0xf] }
  0x69   : > { %920 = vmatpush.bf16.msra.mxu1 %v2498_v57  ;;  %v2763_v22 = vld [vmem:[#allocation7 + $0x10c] sm:$0xf0]  ;;  %v2729_v23 = vld [vmem:[#allocation7 + $0x4] sm:$0xf]  ;;  %v2470_v24 = vor.u32 %v2765_v14, %v2467_v15  ;;  %v2323_v25 = vld [vmem:[#allocation7 + $0x10] sm:$0xf0]  ;;  %v2322_v31 = vor.u32 %v2731_v18, %v2321_v17 }
  0x6a   : > { %949 = vmatpush.bf16.msra.mxu2 %v2374_v58  ;;  %v2761_v26 = vld [vmem:[#allocation7 + $0x104] sm:$0xf]  ;;  %v2451_v27 = vld [vmem:[#allocation7 + $0x110] sm:$0xf0]  ;;  %v2289_v28 = vld [vmem:[%s3410_s14] sm:$0xf]  ;;  %v2450_v35 = vor.u32 %v2763_v22, %v2449_v21  ;;  %v2326_v36 = vor.u32 %v2729_v23, %v2323_v25 }
  0x6b   : > { %978 = vmatpush.bf16.msra.mxu3 %v2502_v62  ;;  %v2758_v29 = vld [vmem:[#allocation7 + $0xec] sm:$0xf]  ;;  %v2443_v30 = vld [vmem:[#allocation7 + $0xf8] sm:$0xf0]  ;;  %v2722_v32 = vld [vmem:[%s3410_s14 + $0x4] sm:$0xf0]  ;;  %v2454_v39 = vor.u32 %v2761_v26, %v2451_v27 }
  0x6c   : > { %892 = vmatpush.bf16.msra.mxu0 %v2354_v4  ;;  %v2790_v33 = vld [vmem:[#allocation7 + $0x1ec] sm:$0xf]  ;;  %v2571_v34 = vld [vmem:[#allocation7 + $0x1f8] sm:$0xf0]  ;;  %v2721_v37 = vld [vmem:[%s3410_s14 + $0x4] sm:$0xf]  ;;  %v2446_v40 = vor.u32 %v2758_v29, %v2443_v30  ;;  %v3438_v44 = vor.u32 %v2722_v32, %v2289_v28 }
  0x6d   : > { %921 = vmatpush.bf16.msra.mxu1 %v2482_v5  ;;  %v2291_v38 = vld [vmem:[%s3410_s14 + $0x8] sm:$0xf0]  ;;  %v2441_v41 = vld [vmem:[#allocation7 + $0xe8] sm:$0xf]  ;;  %v2760_v42 = vld [vmem:[#allocation7 + $0xf4] sm:$0xf0]  ;;  %v2574_v45 = vor.u32 %v2790_v33, %v2571_v34 }
  0x6e   : > { %950 = vmatpush.bf16.msra.mxu2 %v2358_v6  ;;  %v2569_v43 = vld [vmem:[#allocation7 + $0x1e8] sm:$0xf]  ;;  %v2792_v46 = vld [vmem:[#allocation7 + $0x1f4] sm:$0xf0]  ;;  %v2754_v47 = vld [vmem:[#allocation7 + $0xcc] sm:$0xf]  ;;  %v3440_v49 = vor.u32 %v2721_v37, %v2291_v38  ;;  %v2442_v52 = vor.u32 %v2760_v42, %v2441_v41 }
  0x6f   : > { %979 = vmatpush.bf16.msra.mxu3 %v2486_v10  ;;  %v2427_v48 = vld [vmem:[#allocation7 + $0xd8] sm:$0xf0]  ;;  %v2786_v50 = vld [vmem:[#allocation7 + $0x1cc] sm:$0xf]  ;;  %v2570_v53 = vor.u32 %v2792_v46, %v2569_v43  ;;  %v2425_v55 = vld [vmem:[#allocation7 + $0xc8] sm:$0xf] }
  0x70   : > { %893 = vmatpush.bf16.msra.mxu0 %v2338_v16  ;;  %v2555_v51 = vld [vmem:[#allocation7 + $0x1d8] sm:$0xf0]  ;;  %v2430_v54 = vor.u32 %v2754_v47, %v2427_v48  ;;  %v2756_v56 = vld [vmem:[#allocation7 + $0xd4] sm:$0xf0]  ;;  %v2553_v57 = vld [vmem:[#allocation7 + $0x1c8] sm:$0xf] }
  0x71   : > { %922 = vmatpush.bf16.msra.mxu1 %v2466_v19  ;;  %v2558_v58 = vor.u32 %v2786_v50, %v2555_v51  ;;  %v2788_v59 = vld [vmem:[#allocation7 + $0x1d4] sm:$0xf0]  ;;  %v2750_v60 = vld [vmem:[#allocation7 + $0xac] sm:$0xf]  ;;  %v2411_v61 = vld [vmem:[#allocation7 + $0xb8] sm:$0xf0]  ;;  %v2426_v0 = vor.u32 %v2756_v56, %v2425_v55 }
  0x72   : > { %951 = vmatpush.bf16.msra.mxu2 %v2342_v20  ;;  %v2782_v62 = vld [vmem:[#allocation7 + $0x1ac] sm:$0xf]  ;;  %v2539_v63 = vld [vmem:[#allocation7 + $0x1b8] sm:$0xf0]  ;;  %v2554_v1 = vor.u32 %v2788_v59, %v2553_v57  ;;  %v2414_v2 = vor.u32 %v2750_v60, %v2411_v61  ;;  %v2409_v3 = vld [vmem:[#allocation7 + $0xa8] sm:$0xf] }
  0x73   : > { %980 = vmatpush.bf16.msra.mxu3 %v2470_v24  ;;  %v2752_v4 = vld [vmem:[#allocation7 + $0xb4] sm:$0xf0]  ;;  %v2537_v5 = vld [vmem:[#allocation7 + $0x1a8] sm:$0xf]  ;;  %v2542_v6 = vor.u32 %v2782_v62, %v2539_v63  ;;  %v2746_v8 = vld [vmem:[#allocation7 + $0x8c] sm:$0xf] }
  0x74   : > { %894 = vmatpush.bf16.msra.mxu0 %v2322_v31  ;;  %v2784_v7 = vld [vmem:[#allocation7 + $0x1b4] sm:$0xf0]  ;;  %v2395_v9 = vld [vmem:[#allocation7 + $0x98] sm:$0xf0]  ;;  %v2778_v10 = vld [vmem:[#allocation7 + $0x18c] sm:$0xf]  ;;  %v2410_v12 = vor.u32 %v2752_v4, %v2409_v3 }
  0x75   : > { %923 = vmatpush.bf16.msra.mxu1 %v2450_v35  ;;  %v2523_v11 = vld [vmem:[#allocation7 + $0x198] sm:$0xf0]  ;;  %v2297_v13 = vld [vmem:[%s3410_s14 + $0x10] sm:$0xf]  ;;  %v2538_v14 = vor.u32 %v2784_v7, %v2537_v5  ;;  %v2398_v15 = vor.u32 %v2746_v8, %v2395_v9  ;;  %v2393_v16 = vld [vmem:[#allocation7 + $0x88] sm:$0xf] }
  0x76   : > { %952 = vmatpush.bf16.msra.mxu2 %v2326_v36  ;;  %v2748_v17 = vld [vmem:[#allocation7 + $0x94] sm:$0xf0]  ;;  %v2521_v18 = vld [vmem:[#allocation7 + $0x188] sm:$0xf]  ;;  %v2526_v19 = vor.u32 %v2778_v10, %v2523_v11  ;;  %v2742_v21 = vld [vmem:[#allocation7 + $0x6c] sm:$0xf] }
  0x77   : > { %981 = vmatpush.bf16.msra.mxu3 %v2454_v39  ;;  %895 = vmatmul.bf16.vlgmr.msra.gmra.mxu0 %v3438_v44  ;;  %v2780_v20 = vld [vmem:[#allocation7 + $0x194] sm:$0xf0]  ;;  %v2379_v22 = vld [vmem:[#allocation7 + $0x78] sm:$0xf0]  ;;  %v2774_v24 = vld [vmem:[#allocation7 + $0x16c] sm:$0xf]  ;;  %v2394_v28 = vor.u32 %v2748_v17, %v2393_v16 }
  0x78   : > { %924 = vmatmul.bf16.vlgmr.msra.gmra.mxu1 %v3440_v49  ;;  %1003 = vmatpush.bf16.msrb.mxu0 %v2442_v52  ;;  %v2724_v23 = vld [vmem:[%s3410_s14 + $0x14] sm:$0xf0]  ;;  %v2507_v25 = vld [vmem:[#allocation7 + $0x178] sm:$0xf0]  ;;  %v2723_v26 = vld [vmem:[%s3410_s14 + $0x14] sm:$0xf]  ;;  %v2522_v29 = vor.u32 %v2780_v20, %v2521_v18  ;;  %v2382_v30 = vor.u32 %v2742_v21, %v2379_v22 }
  0x79   : > { %953 = vmatmul.bf16.vlgmr.msra.gmra.mxu2 %v3438_v44  ;;  %1032 = vmatpush.bf16.msrb.mxu1 %v2570_v53  ;;  %v2299_v27 = vld [vmem:[%s3410_s14 + $0x18] sm:$0xf0]  ;;  %v2377_v31 = vld [vmem:[#allocation7 + $0x68] sm:$0xf]  ;;  %v2744_v32 = vld [vmem:[#allocation7 + $0x74] sm:$0xf0]  ;;  %v3450_v34 = vor.u32 %v2724_v23, %v2297_v13  ;;  %v2510_v35 = vor.u32 %v2774_v24, %v2507_v25 }
  0x7a   : > { %1061 = vmatpush.bf16.msrb.mxu2 %v2446_v40  ;;  %982 = vmatmul.bf16.vlgmr.msra.gmra.mxu3 %v3440_v49  ;;  %v2505_v33 = vld [vmem:[#allocation7 + $0x168] sm:$0xf]  ;;  %v2776_v36 = vld [vmem:[#allocation7 + $0x174] sm:$0xf0]  ;;  %v2738_v37 = vld [vmem:[#allocation7 + $0x4c] sm:$0xf]  ;;  %v3452_v39 = vor.u32 %v2723_v26, %v2299_v27  ;;  %v2378_v42 = vor.u32 %v2744_v32, %v2377_v31 }
  0x7b   : > { %1090 = vmatpush.bf16.msrb.mxu3 %v2574_v45  ;;  %v2363_v38 = vld [vmem:[#allocation7 + $0x58] sm:$0xf0]  ;;  %v2770_v40 = vld [vmem:[#allocation7 + $0x14c] sm:$0xf]  ;;  %v2506_v43 = vor.u32 %v2776_v36, %v2505_v33  ;;  %v2361_v46 = vld [vmem:[#allocation7 + $0x48] sm:$0xf] }
  0x7c   : > { %1004 = vmatpush.bf16.msrb.mxu0 %v2426_v0  ;;  %v2491_v41 = vld [vmem:[#allocation7 + $0x158] sm:$0xf0]  ;;  %v2366_v45 = vor.u32 %v2738_v37, %v2363_v38  ;;  %v2740_v47 = vld [vmem:[#allocation7 + $0x54] sm:$0xf0]  ;;  %v2489_v51 = vld [vmem:[#allocation7 + $0x148] sm:$0xf] }
  0x7d   : > { %1033 = vmatpush.bf16.msrb.mxu1 %v2554_v1  ;;  %v2494_v48 = vor.u32 %v2770_v40, %v2491_v41  ;;  %v2362_v50 = vor.u32 %v2740_v47, %v2361_v46  ;;  %v2772_v52 = vld [vmem:[#allocation7 + $0x154] sm:$0xf0]  ;;  %v2734_v53 = vld [vmem:[#allocation7 + $0x2c] sm:$0xf]  ;;  %v2347_v55 = vld [vmem:[#allocation7 + $0x38] sm:$0xf0] }
  0x7e   : > { %1062 = vmatpush.bf16.msrb.mxu2 %v2430_v54  ;;  %v2490_v54 = vor.u32 %v2772_v52, %v2489_v51  ;;  %v2766_v56 = vld [vmem:[#allocation7 + $0x12c] sm:$0xf]  ;;  %v2475_v57 = vld [vmem:[#allocation7 + $0x138] sm:$0xf0]  ;;  %v2345_v60 = vld [vmem:[#allocation7 + $0x28] sm:$0xf] }
  0x7f   : > { %1091 = vmatpush.bf16.msrb.mxu3 %v2558_v58  ;;  %v2350_v58 = vor.u32 %v2734_v53, %v2347_v55  ;;  %v2478_v59 = vor.u32 %v2766_v56, %v2475_v57  ;;  %v2736_v61 = vld [vmem:[#allocation7 + $0x34] sm:$0xf0]  ;;  %v2473_v62 = vld [vmem:[#allocation7 + $0x128] sm:$0xf]  ;;  %v2730_v0 = vld [vmem:[#allocation7 + $0xc] sm:$0xf] }
  0x80   : > { %1005 = vmatpush.bf16.msrb.mxu0 %v2410_v12  ;;  %v2768_v63 = vld [vmem:[#allocation7 + $0x134] sm:$0xf0]  ;;  %v2331_v1 = vld [vmem:[#allocation7 + $0x18] sm:$0xf0]  ;;  %v2762_v3 = vld [vmem:[#allocation7 + $0x10c] sm:$0xf] }
  0x81   : > { %1034 = vmatpush.bf16.msrb.mxu1 %v2538_v14  ;;  %v2459_v4 = vld [vmem:[#allocation7 + $0x118] sm:$0xf0]  ;;  %v2474_v5 = vor.u32 %v2768_v63, %v2473_v62  ;;  %v2329_v7 = vld [vmem:[#allocation7 + $0x8] sm:$0xf]  ;;  %v2732_v8 = vld [vmem:[#allocation7 + $0x14] sm:$0xf0] }
  0x82   : > { %1063 = vmatpush.bf16.msrb.mxu2 %v2414_v2  ;;  %v2346_v2 = vor.u32 %v2736_v61, %v2345_v60  ;;  %v2462_v9 = vor.u32 %v2762_v3, %v2459_v4  ;;  %v2457_v10 = vld [vmem:[#allocation7 + $0x108] sm:$0xf]  ;;  %v2764_v11 = vld [vmem:[#allocation7 + $0x114] sm:$0xf0]  ;;  %v2305_v12 = vld [vmem:[%s3410_s14 + $0x20] sm:$0xf]  ;;  %v2330_v16 = vor.u32 %v2732_v8, %v2329_v7 }
  0x83   : > { %1092 = vmatpush.bf16.msrb.mxu3 %v2542_v6  ;;  %v2334_v6 = vor.u32 %v2730_v0, %v2331_v1  ;;  %v2726_v13 = vld [vmem:[%s3410_s14 + $0x24] sm:$0xf0]  ;;  %v2725_v14 = vld [vmem:[%s3410_s14 + $0x24] sm:$0xf]  ;;  %v2458_v17 = vor.u32 %v2764_v11, %v2457_v10  ;;  %v2807_v20 = vld [vmem:[#allocation10 + $0x74] sm:$0xf] }
  0x84   : > { %1006 = vmatpush.bf16.msrb.mxu0 %v2394_v28  ;;  %v3462_v18 = vor.u32 %v2726_v13, %v2305_v12  ;;  %v2635_v21 = vld [vmem:[#allocation10 + $0x78] sm:$0xf0]  ;;  %v2823_v22 = vld [vmem:[#allocation10 + $0xf4] sm:$0xf]  ;;  %v2633_v25 = vld [vmem:[#allocation10 + $0x70] sm:$0xf] }
  0x85   : > { %1035 = vmatpush.bf16.msrb.mxu1 %v2522_v29  ;;  %v2638_v23 = vor.u32 %v2807_v20, %v2635_v21  ;;  %v2699_v24 = vld [vmem:[#allocation10 + $0xf8] sm:$0xf0]  ;;  %v2808_v26 = vld [vmem:[#allocation10 + $0x74] sm:$0xf0]  ;;  %v2697_v29 = vld [vmem:[#allocation10 + $0xf0] sm:$0xf] }
  0x86   : > { %1064 = vmatpush.bf16.msrb.mxu2 %v2398_v15  ;;  %v2307_v15 = vld [vmem:[%s3410_s14 + $0x28] sm:$0xf0]  ;;  %v2702_v27 = vor.u32 %v2823_v22, %v2699_v24  ;;  %v2634_v28 = vor.u32 %v2808_v26, %v2633_v25  ;;  %v2805_v31 = vld [vmem:[#allocation10 + $0x64] sm:$0xf]  ;;  %v2627_v33 = vld [vmem:[#allocation10 + $0x68] sm:$0xf0] }
  0x87   : > { %1093 = vmatpush.bf16.msrb.mxu3 %v2526_v19  ;;  %900 = vmatmul.bf16.gmra.mxu0 %v3450_v34  ;;  %v3464_v19 = vor.u32 %v2725_v14, %v2307_v15  ;;  %v2691_v36 = vld [vmem:[#allocation10 + $0xe8] sm:$0xf0]  ;;  %v2630_v37 = vor.u32 %v2805_v31, %v2627_v33  ;;  %v2625_v40 = vld [vmem:[#allocation10 + $0x60] sm:$0xf]  ;;  %v2806_v41 = vld [vmem:[#allocation10 + $0x64] sm:$0xf0] }
  0x88   : > { %929 = vmatmul.bf16.gmra.mxu1 %v3452_v39  ;;  %1007 = vmatpush.bf16.msrb.mxu0 %v2378_v42  ;;  %v2626_v42 = vor.u32 %v2806_v41, %v2625_v40  ;;  %v2727_v46 = vld [vmem:[%s3410_s14 + $0x34] sm:$0xf]  ;;  %v2315_v47 = vld [vmem:[%s3410_s14 + $0x38] sm:$0xf0]  ;;  %v2689_v51 = vld [vmem:[#allocation10 + $0xe0] sm:$0xf] }
  0x89   : > { %958 = vmatmul.bf16.gmra.mxu2 %v3450_v34  ;;  %1036 = vmatpush.bf16.msrb.mxu1 %v2506_v43  ;;  %v2313_v43 = vld [vmem:[%s3410_s14 + $0x30] sm:$0xf]  ;;  %v2822_v52 = vld [vmem:[#allocation10 + $0xe4] sm:$0xf0]  ;;  %v2803_v53 = vld [vmem:[#allocation10 + $0x54] sm:$0xf] }
  0x8a   : > { %1065 = vmatpush.bf16.msrb.mxu2 %v2382_v30  ;;  %987 = vmatmul.bf16.gmra.mxu3 %v3452_v39  ;;  %v2824_v30 = vld [vmem:[#allocation10 + $0xf4] sm:$0xf0]  ;;  %v2619_v55 = vld [vmem:[#allocation10 + $0x58] sm:$0xf0]  ;;  %v2819_v56 = vld [vmem:[#allocation10 + $0xd4] sm:$0xf] }
  0x8b   : > { %1094 = vmatpush.bf16.msrb.mxu3 %v2510_v35  ;;  %v2698_v32 = vor.u32 %v2824_v30, %v2697_v29  ;;  %v2821_v35 = vld [vmem:[#allocation10 + $0xe4] sm:$0xf]  ;;  %v2683_v57 = vld [vmem:[#allocation10 + $0xd8] sm:$0xf0]  ;;  %v2617_v60 = vld [vmem:[#allocation10 + $0x50] sm:$0xf] }
  0x8c   : > { %1008 = vmatpush.bf16.msrb.mxu0 %v2362_v50  ;;  %v2694_v38 = vor.u32 %v2821_v35, %v2691_v36  ;;  %v3476_v50 = vor.u32 %v2727_v46, %v2315_v47  ;;  %v2804_v61 = vld [vmem:[#allocation10 + $0x54] sm:$0xf0]  ;;  %v2681_v62 = vld [vmem:[#allocation10 + $0xd0] sm:$0xf]  ;;  %v2801_v1 = vld [vmem:[#allocation10 + $0x44] sm:$0xf] }
  0x8d   : > { %1037 = vmatpush.bf16.msrb.mxu1 %v2490_v54  ;;  %v2690_v54 = vor.u32 %v2822_v52, %v2689_v51  ;;  %v2618_v63 = vor.u32 %v2804_v61, %v2617_v60  ;;  %v2820_v0 = vld [vmem:[#allocation10 + $0xd4] sm:$0xf0]  ;;  %v2609_v7 = vld [vmem:[#allocation10 + $0x40] sm:$0xf]  ;;  %v2818_v12 = vld [vmem:[#allocation10 + $0xc4] sm:$0xf0] }
  0x8e   : > { %1066 = vmatpush.bf16.msrb.mxu2 %v2366_v45  ;;  %v2728_v45 = vld [vmem:[%s3410_s14 + $0x34] sm:$0xf0]  ;;  %v2682_v3 = vor.u32 %v2820_v0, %v2681_v62  ;;  %v2673_v11 = vld [vmem:[#allocation10 + $0xc0] sm:$0xf]  ;;  %v2603_v15 = vld [vmem:[#allocation10 + $0x38] sm:$0xf0] }
  0x8f   : > { %1095 = vmatpush.bf16.msrb.mxu3 %v2494_v48  ;;  %v3474_v48 = vor.u32 %v2728_v45, %v2313_v43  ;;  %v2799_v13 = vld [vmem:[#allocation10 + $0x34] sm:$0xf]  ;;  %v2674_v14 = vor.u32 %v2818_v12, %v2673_v11  ;;  %v2601_v22 = vld [vmem:[#allocation10 + $0x30] sm:$0xf]  ;;  %v2816_v26 = vld [vmem:[#allocation10 + $0xb4] sm:$0xf0] }
  0x90   : > { %1009 = vmatpush.bf16.msrb.mxu0 %v2346_v2  ;;  %v2611_v2 = vld [vmem:[#allocation10 + $0x48] sm:$0xf0]  ;;  %v2606_v20 = vor.u32 %v2799_v13, %v2603_v15  ;;  %v2665_v24 = vld [vmem:[#allocation10 + $0xb0] sm:$0xf]  ;;  %v2813_v29 = vld [vmem:[#allocation10 + $0xa4] sm:$0xf] }
  0x91   : > { %1038 = vmatpush.bf16.msrb.mxu1 %v2474_v5  ;;  %v2614_v4 = vor.u32 %v2801_v1, %v2611_v2  ;;  %v2817_v5 = vld [vmem:[#allocation10 + $0xc4] sm:$0xf]  ;;  %v2659_v30 = vld [vmem:[#allocation10 + $0xa8] sm:$0xf0]  ;;  %v2593_v31 = vld [vmem:[#allocation10 + $0x20] sm:$0xf] }
  0x92   : > { %1067 = vmatpush.bf16.msrb.mxu2 %v2350_v58  ;;  %v2622_v58 = vor.u32 %v2803_v53, %v2619_v55  ;;  %v2798_v33 = vld [vmem:[#allocation10 + $0x24] sm:$0xf0]  ;;  %v2657_v36 = vld [vmem:[#allocation10 + $0xa0] sm:$0xf]  ;;  %v2587_v41 = vld [vmem:[#allocation10 + $0x18] sm:$0xf0] }
  0x93   : > { %1096 = vmatpush.bf16.msrb.mxu3 %v2478_v59  ;;  %v2686_v59 = vor.u32 %v2819_v56, %v2683_v57  ;;  %v2594_v35 = vor.u32 %v2798_v33, %v2593_v31  ;;  %v2651_v43 = vld [vmem:[#allocation10 + $0x98] sm:$0xf0]  ;;  %v2585_v47 = vld [vmem:[#allocation10 + $0x10] sm:$0xf]  ;;  %v2796_v51 = vld [vmem:[#allocation10 + $0x14] sm:$0xf0] }
  0x94   : > { %1010 = vmatpush.bf16.msrb.mxu0 %v2330_v16  ;;  %v2815_v16 = vld [vmem:[#allocation10 + $0xb4] sm:$0xf]  ;;  %v2649_v52 = vld [vmem:[#allocation10 + $0x90] sm:$0xf]  ;;  %v2586_v53 = vor.u32 %v2796_v51, %v2585_v47  ;;  %v2793_v55 = vld [vmem:[#allocation10 + $0x4] sm:$0xf] }
  0x95   : > { %1039 = vmatpush.bf16.msrb.mxu1 %v2458_v17  ;;  %v2667_v17 = vld [vmem:[#allocation10 + $0xb8] sm:$0xf0]  ;;  %v2579_v56 = vld [vmem:[#allocation10 + $0x8] sm:$0xf0]  ;;  %v2809_v57 = vld [vmem:[#allocation10 + $0x84] sm:$0xf] }
  0x96   : > { %1068 = vmatpush.bf16.msrb.mxu2 %v2334_v6  ;;  %v2675_v6 = vld [vmem:[#allocation10 + $0xc8] sm:$0xf0]  ;;  %v2670_v21 = vor.u32 %v2815_v16, %v2667_v17  ;;  %v2577_v60 = vld [vmem:[#allocation10] sm:$0xf]  ;;  %v2794_v61 = vld [vmem:[#allocation10 + $0x4] sm:$0xf0] }
  0x97   : > { %1097 = vmatpush.bf16.msrb.mxu3 %v2462_v9  ;;  %905 = vmatmul.bf16.gmra.mxu0 %v3462_v18  ;;  %v2678_v8 = vor.u32 %v2817_v5, %v2675_v6  ;;  %v2802_v9 = vld [vmem:[#allocation10 + $0x44] sm:$0xf0]  ;;  %v2641_v62 = vld [vmem:[#allocation10 + $0x80] sm:$0xf]  ;;  %v432_v5 = vld [vmem:[%s3420_s20 + $0x18] sm:$0xff]  ;;  %vm1613_vm0 = vcmask 261120  }
  0x98   : > { %934 = vmatmul.bf16.gmra.mxu1 %v3464_v19  ;;  %1333 = vmatpush.bf16.msra.mxu0 %v2634_v28  ;;  %v2610_v10 = vor.u32 %v2802_v9, %v2609_v7  ;;  %v2595_v28 = vld [vmem:[#allocation10 + $0x28] sm:$0xf0]  ;;  %v2810_v0 = vld [vmem:[#allocation10 + $0x84] sm:$0xf0]  ;;  %v429_v2 = vld [vmem:[%s3420_s20] sm:$0xff]  ;;  %s3818_s23 = scalar_lea.vmem [#allocation11], %s2282_s15 }
  0x99   : > { %963 = vmatmul.bf16.gmra.mxu2 %v3462_v18  ;;  %1362 = vmatpush.bf16.msra.mxu1 %v2698_v32  ;;  %v2662_v32 = vor.u32 %v2813_v29, %v2659_v30  ;;  %v2642_v1 = vor.u32 %v2810_v0, %v2641_v62  ;;  %v435_v11 = vld [vmem:[%s3420_s20 + $0x30] sm:$0xff]  ;;  %v434_v12 = vld [vmem:[%s3420_s20 + $0x28] sm:$0xff]  ;;  %v436_v13 = vld [vmem:[%s3420_s20 + $0x38] sm:$0xff]  ;;  %s2826_s2 = sshll.u32 %s3280_s9, 7  ;;  %s2139_s9 = sshll.u32 %s3818_s23, 4  ;;  %s2140_s9 = int_to_ptr.vmem [resolvable:$true] %s2139_s9 }
  0x9a   : > { %992 = vmatmul.bf16.gmra.mxu3 %v3464_v19  ;;  %1391 = vmatpush.bf16.msra.mxu2 %v2638_v23  ;;  %v2800_v23 = vld [vmem:[#allocation10 + $0x34] sm:$0xf0]  ;;  %v3517_v29 = vld [vmem:[%s3420_s20 + $0x40] sm:$0xff]  ;;  %v3520_v30 = vld [vmem:[%s3420_s20 + $0x50] sm:$0xff]  ;;  %s2138_s29 = scalar_lea.hbm %s3944_s8, %s2826_s2  ;;  %s2126_s26 = scalar_lea.sflag [#allocation4], %s3406_s18 }
  0x9b   : > { %1420 = vmatpush.bf16.msra.mxu3 %v2702_v27  ;;  %v2602_v25 = vor.u32 %v2800_v23, %v2601_v22  ;;  %v2797_v27 = vld [vmem:[#allocation10 + $0x24] sm:$0xf]  ;;  %v3506_v22 = vld [vmem:[#allocation8] sm:$0xf]  ;;  %s2141_s12 = sshll.u32 %s2138_s29, 4  ;;  %s3144_s13 = scalar_lea.hbm %s3944_s8, 256  ;;  %s2142_s12 = int_to_ptr.hbm [resolvable:$true] %s2141_s12 }
  0x9c   : > { %1334 = vmatpush.bf16.msra.mxu0 %v2626_v42  ;;  %v2811_v42 = vld [vmem:[#allocation10 + $0x94] sm:$0xf]  ;;  %v3523_v31 = vld [vmem:[%s3420_s20 + $0x48] sm:$0xff]  ;;  %s3138_s10 = sshra.s32 %s2142_s12, 4  ;;  %s3139_s10 = int_to_ptr.hbm [resolvable:$true] %s3138_s10 }
  0x9d   : > { %1363 = vmatpush.bf16.msra.mxu1 %v2690_v54  ;;  %v2654_v46 = vor.u32 %v2811_v42, %v2651_v43  ;;  %v2812_v54 = vld [vmem:[#allocation10 + $0x94] sm:$0xf0]  ;;  %s3140_s14 = scalar_lea.hbm %s3139_s10, 128  ;;  %p3145_p2 = scmp.lt.s32.totalorder %s3139_s10, %s3944_s8 }
  0x9e   : > { %1392 = vmatpush.bf16.msra.mxu2 %v2630_v37  ;;  %v2814_v37 = vld [vmem:[#allocation10 + $0xa4] sm:$0xf0]  ;;  %p3141_p1 = scmp.ne.s32.totalorder %s3139_s10, %s3140_s14  ;;  %p3146_p10 = scmp.lt.s32.totalorder %s3144_s13, %s3140_s14 }
  0x9f   : > { %1421 = vmatpush.bf16.msra.mxu3 %v2694_v38  ;;  %v2795_v38 = vld [vmem:[#allocation10 + $0x14] sm:$0xf]  ;;  %v2658_v40 = vor.u32 %v2814_v37, %v2657_v36 }
  0xa0   : > { %1335 = vmatpush.bf16.msra.mxu0 %v2618_v63  ;;  %v2590_v45 = vor.u32 %v2795_v38, %v2587_v41  ;;  %v2578_v63 = vor.u32 %v2794_v61, %v2577_v60  ;;  %v449_v38 = vpack.c.bf16 %v3520_v30, %v3517_v29  ;;  %p3142_p4 = pnand %p3141_p1, %p3348_p7  ;;  %p3147_p11 = por %p3146_p10, %p3145_p2 }
  0xa1   : > { %1364 = vmatpush.bf16.msra.mxu1 %v2682_v3  ;;  %v431_v3 = vld [vmem:[%s3420_s20 + $0x10] sm:$0xff] }
  0xa2   : > { %1393 = vmatpush.bf16.msra.mxu2 %v2622_v58  ;;  %v2643_v58 = vld [vmem:[#allocation10 + $0x88] sm:$0xf0]  ;;  %v445_v6 = vpack.c.bf16 %v431_v3, %v429_v2  ;;  %p3143_p8 = pneg %p3142_p4 }
  0xa3   : > { %1422 = vmatpush.bf16.msra.mxu3 %v2686_v59  ;;  %v2646_v59 = vor.u32 %v2809_v57, %v2643_v58 }
  0xa4   : > { %1336 = vmatpush.bf16.msra.mxu0 %v2610_v10  ;;  %v433_v10 = vld [vmem:[%s3420_s20 + $0x20] sm:$0xff]  ;;  %p3148_p9 = pnand %p3147_p11, %p3143_p8 }
  0xa5   : > { %1365 = vmatpush.bf16.msra.mxu1 %v2674_v14  ;;  %v447_v15 = vpack.c.bf16 %v435_v11, %v433_v10 }
  0xa6   : > { %1394 = vmatpush.bf16.msra.mxu2 %v2614_v4  ;;  %v430_v4 = vld [vmem:[%s3420_s20 + $0x8] sm:$0xff] }
  0xa7   : > { %910 = vmatmul.bf16.gmra.mxu0 %v3474_v48  ;;  %1423 = vmatpush.bf16.msra.mxu3 %v2678_v8  ;;  %v446_v7 = vpack.c.bf16 %v432_v5, %v430_v4 }
  0xa8   : > { %939 = vmatmul.bf16.gmra.mxu1 %v3476_v50  ;;  %1337 = vmatpush.bf16.msra.mxu0 %v2602_v25  ;;  %v3512_v25 = vperm.slane %v3506_v22, 1 }
  0xa9   : > { %968 = vmatmul.bf16.gmra.mxu2 %v3474_v48 }
  0xaa   : > { %997 = vmatmul.bf16.gmra.mxu3 %v3476_v50  ;;  %1395 = vmatpush.bf16.msra.mxu2 %v2606_v20  ;;  %v448_v20 = vpack.c.bf16 %v436_v13, %v434_v12 }
  0xab   : > { %1424 = vmatpush.bf16.msra.mxu3 %v2670_v21 }
  0xac   : > { %1338 = vmatpush.bf16.msra.mxu0 %v2594_v35 }
  0xaf   : > { %1425 = vmatpush.bf16.msra.mxu3 %v2662_v32  ;;  %v3526_v32 = vld [vmem:[%s3420_s20 + $0x58] sm:$0xff] }
  0xb0   : > { %1339 = vmatpush.bf16.msra.mxu0 %v2586_v53 }
  0xb3   : > { %1426 = vmatpush.bf16.msra.mxu3 %v2654_v46 }
  0xb4   : > { %1340 = vmatpush.bf16.msra.mxu0 %v2578_v63 }
  0xb7   : > { %1011 = vmatmul.bf16.vlgmr.msrb.gmra.mxu0 %v3438_v44  ;;  %1427 = vmatpush.bf16.msra.mxu3 %v2646_v59 }
  0xb8   : > { %1040 = vmatmul.bf16.vlgmr.msrb.gmra.mxu1 %v3440_v49 }
  0xb9   : > { %1069 = vmatmul.bf16.vlgmr.msrb.gmra.mxu2 %v3438_v44  ;;  %v2666_v44 = vor.u32 %v2816_v26, %v2665_v24  ;;  %v3509_v24 = vperm.slane %v3506_v22, 0 }
  0xba   : > { %1098 = vmatmul.bf16.vlgmr.msrb.gmra.mxu3 %v3440_v49  ;;  %v2598_v49 = vor.u32 %v2797_v27, %v2595_v28 }
  0xbb   : > { %1366 = vmatpush.bf16.msra.mxu1 %v2666_v44 }
  0xbc   : > { %1396 = vmatpush.bf16.msra.mxu2 %v2598_v49 }
  0xbf   : > { %1367 = vmatpush.bf16.msra.mxu1 %v2658_v40 }
  0xc0   : > { %1397 = vmatpush.bf16.msra.mxu2 %v2590_v45  ;;  %v450_v45 = vpack.c.bf16 %v3526_v32, %v3523_v31 }
  0xc7   : > { %1016 = vmatmul.bf16.gmra.mxu0 %v3450_v34 }
  0xc8   : > { %1045 = vmatmul.bf16.gmra.mxu1 %v3452_v39 }
  0xc9   : > { %1074 = vmatmul.bf16.gmra.mxu2 %v3450_v34  ;;  %v2650_v34 = vor.u32 %v2812_v54, %v2649_v52 }
  0xca   : > { %1103 = vmatmul.bf16.gmra.mxu3 %v3452_v39  ;;  %v2582_v39 = vor.u32 %v2793_v55, %v2579_v56 }
  0xcb   : > { %1368 = vmatpush.bf16.msra.mxu1 %v2650_v34 }
  0xcc   : > { %1398 = vmatpush.bf16.msra.mxu2 %v2582_v39 }
  0xcf   : > { %1369 = vmatpush.bf16.msra.mxu1 %v2642_v1 }
  0xd7   : > { %1021 = vmatmul.bf16.gmra.mxu0 %v3462_v18 }
  0xd8   : > { %1050 = vmatmul.bf16.gmra.mxu1 %v3464_v19 }
  0xd9   : > { %1079 = vmatmul.bf16.gmra.mxu2 %v3462_v18 }
  0xda   : > { %1108 = vmatmul.bf16.gmra.mxu3 %v3464_v19 }
  0xe7   : > { %1026 = vmatmul.bf16.gmra.mxu0 %v3474_v48 }
  0xe8   : > { %1055 = vmatmul.bf16.gmra.mxu1 %v3476_v50 }
  0xe9   : > { %1084 = vmatmul.bf16.gmra.mxu2 %v3474_v48 }
  0xea   : > { %1113 = vmatmul.bf16.gmra.mxu3 %v3476_v50 }
  0xf4   : > { %v896_v18 = vpop.f32.mrf.mxu0 }
  0xf5   : > { %v925_v19 = vpop.f32.mrf.mxu1  ;;  %v897_v46 = vadd.f32 %v896_v18, %v3509_v24 }
  0xf7   : > { %1341 = vmatmul.bf16.vlgmr.msra.gmra.mxu0 %v445_v6  ;;  %v926_v39 = vadd.f32 %v925_v19, %v897_v46  ;;  %v3543_v19 = vld [vmem:[%s3420_s20 + $0x60] sm:$0xff] }
  0xf8   : > { %1370 = vmatmul.bf16.vlgmr.msra.gmra.mxu1 %v446_v7 }
  0xf9   : > { %1399 = vmatmul.bf16.vlgmr.msra.gmra.mxu2 %v445_v6 }
  0xfa   : > { %1428 = vmatmul.bf16.vlgmr.msra.gmra.mxu3 %v446_v7 }
  0xfc   : > { %v954_v8 = vpop.f32.mrf.mxu2  ;;  %v898_v9 = vpop.f32.mrf.mxu0 }
  0xfd   : > { %v983_v48 = vpop.f32.mrf.mxu3  ;;  %v927_v50 = vpop.f32.mrf.mxu1  ;;  %v955_v47 = vadd.f32 %v954_v8, %v3512_v25  ;;  %v899_v51 = vadd.f32 %v898_v9, %v3509_v24  ;;  %v3546_v8 = vld [vmem:[%s3420_s20 + $0x70] sm:$0xff]  ;;  %v3552_v9 = vld [vmem:[%s3420_s20 + $0x78] sm:$0xff] }
  0xfe   : > { %v451_v12 = vpack.c.bf16 %v3546_v8, %v3543_v19 }
  0xff   : > { %v984_v57 = vadd.f32 %v983_v48, %v955_v47  ;;  %v928_v58 = vadd.f32 %v927_v50, %v899_v51  ;;  %v3549_v48 = vld [vmem:[%s3420_s20 + $0x68] sm:$0xff] }
 0x101   : > { %v1119_v6 = vpack.c.bf16 %v984_v57, %v926_v39 }
 0x103   : > { %v1481_v50 = vunpack.c.l.b16 %v1119_v6  ;;  %v1482_v10 = vunpack.c.h.b16 %v1119_v6 }
 0x104   : > { %v956_v14 = vpop.f32.mrf.mxu2  ;;  %v901_v17 = vpop.f32.mrf.mxu0 }
 0x105   : > { %v985_v16 = vpop.f32.mrf.mxu3  ;;  %v930_v21 = vpop.f32.mrf.mxu1  ;;  %v902_v44 = vadd.f32 %v901_v17, %v3509_v24  ;;  %v957_v40 = vadd.f32 %v956_v14, %v3512_v25  ;;  %v452_v17 = vpack.c.bf16 %v3552_v9, %v3549_v48 }
 0x107   : > { %1346 = vmatmul.bf16.gmra.mxu0 %v447_v15  ;;  %v931_v33 = vadd.f32 %v930_v21, %v902_v44  ;;  %v986_v56 = vadd.f32 %v985_v16, %v957_v40 }
 0x108   : > { %1375 = vmatmul.bf16.gmra.mxu1 %v448_v20 }
 0x109   : > { %1404 = vmatmul.bf16.gmra.mxu2 %v447_v15  ;;  %v1120_v0 = vpack.c.bf16 %v986_v56, %v928_v58 }
 0x10a   : > { %1433 = vmatmul.bf16.gmra.mxu3 %v448_v20 }
 0x10b   : > { %v1483_v18 = vunpack.c.l.b16 %v1120_v0  ;;  %v1484_v7 = vunpack.c.h.b16 %v1120_v0 }
 0x10c   : > { %v959_v23 = vpop.f32.mrf.mxu2  ;;  %v903_v27 = vpop.f32.mrf.mxu0 }
 0x10d   : > { %v988_v26 = vpop.f32.mrf.mxu3  ;;  %v932_v28 = vpop.f32.mrf.mxu1  ;;  %v960_v49 = vadd.f32 %v959_v23, %v3512_v25  ;;  %v904_v36 = vadd.f32 %v903_v27, %v3509_v24  ;;  %v1489_v15 = vpack.c.b16 %v1483_v18, %v1481_v50  ;;  %v1490_v16 = vpack.c.b16 %v1484_v7, %v1482_v10 }
 0x10f   : > { %v989_v35 = vadd.f32 %v988_v26, %v960_v49  ;;  %v933_v54 = vadd.f32 %v932_v28, %v904_v36 }
 0x111   : > { %v1121_v53 = vpack.c.bf16 %v989_v35, %v931_v33 }
 0x113   : > { %v1485_v59 = vunpack.c.l.b16 %v1121_v53  ;;  %v1486_v60 = vunpack.c.h.b16 %v1121_v53 }
 0x114   : > { %v961_v37 = vpop.f32.mrf.mxu2  ;;  %v3533_v43 = vpop.f32.mrf.mxu0 }
 0x115   : > { %v962_v41 = vadd.f32 %v961_v37, %v3512_v25  ;;  %v990_v42 = vpop.f32.mrf.mxu3  ;;  %v3540_v52 = vpop.f32.mrf.mxu1 }
 0x117   : > { %v991_v55 = vadd.f32 %v990_v42, %v962_v41  ;;  %1351 = vmatmul.bf16.gmra.mxu0 %v449_v38  ;;  %v907_v42 = vadd.f32 %v3533_v43, %v3509_v24 }
 0x118   : > { %1380 = vmatmul.bf16.gmra.mxu1 %v450_v45 }
 0x119   : > { %v1122_v34 = vpack.c.bf16 %v991_v55, %v933_v54  ;;  %1409 = vmatmul.bf16.gmra.mxu2 %v449_v38 }
 0x11a   : > { %1438 = vmatmul.bf16.gmra.mxu3 %v450_v45 }
 0x11b   : > { %v1487_v61 = vunpack.c.l.b16 %v1122_v34  ;;  %v1488_v62 = vunpack.c.h.b16 %v1122_v34  ;;  %v936_v34 = vadd.f32 %v3540_v52, %v907_v42 }
 0x11c   : > { %v964_v63 = vpop.f32.mrf.mxu2  ;;  %v908_v2 = vpop.f32.mrf.mxu0 }
 0x11d   : > { %v993_v1 = vpop.f32.mrf.mxu3  ;;  %v1491_v3 = vpack.c.b16 %v1487_v61, %v1485_v59  ;;  %v1492_v4 = vpack.c.b16 %v1488_v62, %v1486_v60  ;;  %v937_v5 = vpop.f32.mrf.mxu1  ;;  %v965_v45 = vadd.f32 %v964_v63, %v3512_v25  ;;  %v909_v46 = vadd.f32 %v908_v2, %v3509_v24 }
 0x11f   : > { %1503 = vmatpush.bf16.xpose.msrb.mxu0 %v1491_v3  ;;  %1522 = vmatpush.bf16.xpose.msrb.mxu1 %v1492_v4  ;;  %v994_v39 = vadd.f32 %v993_v1, %v965_v45  ;;  %v938_v57 = vadd.f32 %v937_v5, %v909_v46 }
 0x121   : > { %v1123_v3 = vpack.c.bf16 %v994_v39, %v936_v34 }
 0x123   : > { %v1559_v18 = vunpack.c.l.b16 %v1123_v3  ;;  %v1560_v52 = vunpack.c.h.b16 %v1123_v3 }
 0x124   : > { %v966_v11 = vpop.f32.mrf.mxu2  ;;  %v911_v14 = vpop.f32.mrf.mxu0 }
 0x125   : > { %v995_v13 = vpop.f32.mrf.mxu3  ;;  %v940_v20 = vpop.f32.mrf.mxu1  ;;  %v912_v28 = vadd.f32 %v911_v14, %v3509_v24  ;;  %v967_v37 = vadd.f32 %v966_v11, %v3512_v25  ;;  %v3572_v14 = vperm.slane %v3506_v22, 3 }
 0x127   : > { %1504 = vmatpush.bf16.xpose.msrb.mxu0 %v1489_v15  ;;  %1523 = vmatpush.bf16.xpose.msrb.mxu1 %v1490_v16  ;;  %v941_v49 = vadd.f32 %v940_v20, %v912_v28  ;;  %v996_v55 = vadd.f32 %v995_v13, %v967_v37  ;;  %v3569_v13 = vperm.slane %v3506_v22, 2 }
 0x128   : > { %1356 = vmatmul.bf16.gmra.mxu0 %v451_v12  ;;  %1385 = vmatmul.bf16.gmra.mxu1 %v452_v17 }
 0x129   : > { %1414 = vmatmul.bf16.gmra.mxu2 %v451_v12  ;;  %v1124_v43 = vpack.c.bf16 %v996_v55, %v938_v57 }
 0x12a   : > { %1443 = vmatmul.bf16.gmra.mxu3 %v452_v17 }
 0x12b   : > { %v1561_v4 = vunpack.c.l.b16 %v1124_v43  ;;  %v1562_v6 = vunpack.c.h.b16 %v1124_v43 }
 0x12c   : > { %v969_v21 = vpop.f32.mrf.mxu2  ;;  %v913_v26 = vpop.f32.mrf.mxu0 }
 0x12d   : > { %v998_v23 = vpop.f32.mrf.mxu3  ;;  %v942_v27 = vpop.f32.mrf.mxu1  ;;  %v970_v44 = vadd.f32 %v969_v21, %v3512_v25  ;;  %v914_v35 = vadd.f32 %v913_v26, %v3509_v24  ;;  %v1567_v50 = vpack.c.b16 %v1561_v4, %v1559_v18  ;;  %v1568_v10 = vpack.c.b16 %v1562_v6, %v1560_v52 }
 0x12f   : > { %v999_v33 = vadd.f32 %v998_v23, %v970_v44  ;;  %v943_v53 = vadd.f32 %v942_v27, %v914_v35 }
 0x131   : > { %v1125_v51 = vpack.c.bf16 %v999_v33, %v941_v49 }
 0x133   : > { %v1563_v58 = vunpack.c.l.b16 %v1125_v51  ;;  %v1564_v59 = vunpack.c.h.b16 %v1125_v51 }
 0x134   : > { %v971_v36 = vpop.f32.mrf.mxu2  ;;  %v1012_v41 = vpop.f32.mrf.mxu0 }
 0x135   : > { %v972_v38 = vadd.f32 %v971_v36, %v3512_v25  ;;  %v1000_v40 = vpop.f32.mrf.mxu3  ;;  %v1041_v47 = vpop.f32.mrf.mxu1  ;;  %v1013_v26 = vadd.f32 %v1012_v41, %v3569_v13 }
 0x137   : > { %v1001_v54 = vadd.f32 %v1000_v40, %v972_v38  ;;  %v1042_v40 = vadd.f32 %v1041_v47, %v1013_v26 }
 0x139   : > { %v1126_v56 = vpack.c.bf16 %v1001_v54, %v943_v53 }
 0x13b   : > { %v1565_v60 = vunpack.c.l.b16 %v1126_v56  ;;  %v1566_v61 = vunpack.c.h.b16 %v1126_v56 }
 0x13c   : > { %v1070_v62 = vpop.f32.mrf.mxu2  ;;  %v1014_v25 = vpop.f32.mrf.mxu0 }
 0x13d   : > { %v1099_v0 = vpop.f32.mrf.mxu3  ;;  %v1569_v63 = vpack.c.b16 %v1565_v60, %v1563_v58  ;;  %v1570_v24 = vpack.c.b16 %v1566_v61, %v1564_v59  ;;  %v1043_v2 = vpop.f32.mrf.mxu1  ;;  %v1071_v27 = vadd.f32 %v1070_v62, %v3572_v14  ;;  %v1015_v28 = vadd.f32 %v1014_v25, %v3569_v13 }
 0x13f   : > { %1581 = vmatpush.bf16.xpose.msrb.mxu2 %v1569_v63  ;;  %1600 = vmatpush.bf16.xpose.msrb.mxu3 %v1570_v24  ;;  %v1100_v42 = vadd.f32 %v1099_v0, %v1071_v27  ;;  %v1044_v46 = vadd.f32 %v1043_v2, %v1015_v28 }
 0x141   : > { %v1127_v56 = vpack.c.bf16 %v1100_v42, %v1042_v40  ;;  %v1167_v42 = vld [vmem:[%s3941_s5] sm:$0x3] }
 0x143   : > { %v1724_v63 = vunpack.c.l.b16 %v1127_v56  ;;  %v1725_v24 = vunpack.c.h.b16 %v1127_v56 }
 0x144   : > { %v1072_v1 = vpop.f32.mrf.mxu2  ;;  %v1017_v7 = vpop.f32.mrf.mxu0 }
 0x145   : > { %v1101_v5 = vpop.f32.mrf.mxu3  ;;  %v1046_v11 = vpop.f32.mrf.mxu1  ;;  %v1018_v20 = vadd.f32 %v1017_v7, %v3569_v13  ;;  %v1073_v23 = vadd.f32 %v1072_v1, %v3572_v14 }
 0x147   : > { %1582 = vmatpush.bf16.xpose.msrb.mxu2 %v1567_v50  ;;  %1601 = vmatpush.bf16.xpose.msrb.mxu3 %v1568_v10  ;;  %v1047_v44 = vadd.f32 %v1046_v11, %v1018_v20  ;;  %v1102_v35 = vadd.f32 %v1101_v5, %v1073_v23 }
 0x149   : > { %v1128_v54 = vpack.c.bf16 %v1102_v35, %v1044_v46 }
 0x14b   : > { %v1726_v60 = vunpack.c.l.b16 %v1128_v54  ;;  %v1727_v61 = vunpack.c.h.b16 %v1128_v54 }
 0x14c   : > { %v1075_v12 = vpop.f32.mrf.mxu2  ;;  %v1019_v16 = vpop.f32.mrf.mxu0 }
 0x14d   : > { %v1104_v15 = vpop.f32.mrf.mxu3  ;;  %v1048_v17 = vpop.f32.mrf.mxu1  ;;  %v1076_v21 = vadd.f32 %v1075_v12, %v3572_v14  ;;  %v1020_v22 = vadd.f32 %v1019_v16, %v3569_v13  ;;  %v1732_v2 = vpack.c.b16 %v1726_v60, %v1724_v63  ;;  %v1733_v3 = vpack.c.b16 %v1727_v61, %v1725_v24 }
 0x14f   : > { %v1105_v49 = vadd.f32 %v1104_v15, %v1076_v21  ;;  %v1049_v41 = vadd.f32 %v1048_v17, %v1020_v22 }
 0x151   : > { %v1129_v51 = vpack.c.bf16 %v1105_v49, %v1047_v44 }
 0x153   : > { %v1728_v34 = vunpack.c.l.b16 %v1129_v51  ;;  %v1729_v39 = vunpack.c.h.b16 %v1129_v51 }
 0x154   : > { %v1077_v33 = vpop.f32.mrf.mxu2  ;;  %v1022_v38 = vpop.f32.mrf.mxu0 }
 0x155   : > { %v1078_v36 = vadd.f32 %v1077_v33, %v3572_v14  ;;  %v1106_v37 = vpop.f32.mrf.mxu3  ;;  %v1051_v45 = vpop.f32.mrf.mxu1  ;;  %v1023_v15 = vadd.f32 %v1022_v38, %v3569_v13 }
 0x157   : > { %v1107_v53 = vadd.f32 %v1106_v37, %v1078_v36  ;;  %v1052_v22 = vadd.f32 %v1051_v45, %v1023_v15 }
 0x159   : > { %v1130_v55 = vpack.c.bf16 %v1107_v53, %v1049_v41  ;;  %v3593_v41 = vperm.slane %v1167_v42, 0  ;;  %v3595_v53 = vperm.slane %v1167_v42, 1 }
 0x15b   : > { %v1730_v57 = vunpack.c.l.b16 %v1130_v55  ;;  %v1731_v58 = vunpack.c.h.b16 %v1130_v55 }
 0x15c   : > { %v1080_v59 = vpop.f32.mrf.mxu2  ;;  %v1024_v47 = vpop.f32.mrf.mxu0 }
 0x15d   : > { %v1734_v62 = vpack.c.b16 %v1730_v57, %v1728_v34  ;;  %v1735_v43 = vpack.c.b16 %v1731_v58, %v1729_v39  ;;  %v1109_v25 = vpop.f32.mrf.mxu3  ;;  %v1053_v0 = vpop.f32.mrf.mxu1  ;;  %v1081_v16 = vadd.f32 %v1080_v59, %v3572_v14  ;;  %v1025_v17 = vadd.f32 %v1024_v47, %v3569_v13 }
 0x15f   : > { %1752 = vmatpush.bf16.msra.mxu0 %v1734_v62  ;;  %1771 = vmatpush.bf16.msra.mxu1 %v1735_v43  ;;  %v1110_v33 = vadd.f32 %v1109_v25, %v1081_v16  ;;  %v1054_v36 = vadd.f32 %v1053_v0, %v1025_v17 }
 0x163   : > { %1753 = vmatpush.bf16.msra.mxu0 %v1732_v2  ;;  %1772 = vmatpush.bf16.msra.mxu1 %v1733_v3 }
 0x164   : > { %v1082_v4 = vpop.f32.mrf.mxu2  ;;  %v1027_v18 = vpop.f32.mrf.mxu0 }
 0x165   : > { %v1111_v6 = vpop.f32.mrf.mxu3  ;;  %v1056_v52 = vpop.f32.mrf.mxu1  ;;  %v1028_v10 = vadd.f32 %v1027_v18, %v3569_v13  ;;  %v1083_v12 = vadd.f32 %v1082_v4, %v3572_v14 }
 0x167   : > { %v1057_v20 = vadd.f32 %v1056_v52, %v1028_v10  ;;  %v1112_v27 = vadd.f32 %v1111_v6, %v1083_v12 }
 0x169   : > { %v1132_v46 = vpack.c.bf16 %v1112_v27, %v1054_v36 }
 0x16b   : > { %v1800_v34 = vunpack.c.l.b16 %v1132_v46  ;;  %v1801_v39 = vunpack.c.h.b16 %v1132_v46 }
 0x16c   : > { %v1085_v1 = vpop.f32.mrf.mxu2  ;;  %v1029_v7 = vpop.f32.mrf.mxu0 }
 0x16d   : > { %v1114_v5 = vpop.f32.mrf.mxu3  ;;  %v1058_v50 = vpop.f32.mrf.mxu1  ;;  %v1086_v11 = vadd.f32 %v1085_v1, %v3572_v14  ;;  %v1030_v23 = vadd.f32 %v1029_v7, %v3569_v13  ;;  %v1131_v13 = vpack.c.bf16 %v1110_v33, %v1052_v22 }
 0x16f   : > { %v1115_v21 = vadd.f32 %v1114_v5, %v1086_v11  ;;  %v1059_v38 = vadd.f32 %v1058_v50, %v1030_v23  ;;  %v1798_v62 = vunpack.c.l.b16 %v1131_v13  ;;  %v1799_v43 = vunpack.c.h.b16 %v1131_v13 }
 0x171   : > { %v1133_v37 = vpack.c.bf16 %v1115_v21, %v1057_v20  ;;  %v1806_v0 = vpack.c.b16 %v1800_v34, %v1798_v62  ;;  %v1807_v63 = vpack.c.b16 %v1801_v39, %v1799_v43 }
 0x173   : > { %v1803_v54 = vunpack.c.h.b16 %v1133_v37 }
 0x174   : > { %v1087_v26 = vpop.f32.mrf.mxu2  ;;  %v1342_v49 = vpop.f32.mrf.mxu0 }
 0x175   : > { %v1088_v28 = vadd.f32 %v1087_v26, %v3572_v14  ;;  %v1116_v44 = vpop.f32.mrf.mxu3  ;;  %v1371_v35 = vpop.f32.mrf.mxu1  ;;  %v1802_v14 = vunpack.c.l.b16 %v1133_v37  ;;  %v1343_v25 = vadd.f32 %v1342_v49, %v3593_v41 }
 0x177   : > { %v1117_v40 = vadd.f32 %v1116_v44, %v1088_v28  ;;  %v1372_v24 = vadd.f32 %v1371_v35, %v1343_v25 }
 0x179   : > { %v1134_v51 = vpack.c.bf16 %v1117_v40, %v1059_v38 }
 0x17b   : > { %v1804_v45 = vunpack.c.l.b16 %v1134_v51  ;;  %v1805_v55 = vunpack.c.h.b16 %v1134_v51 }
 0x17c   : > { %v1400_v56 = vpop.f32.mrf.mxu2  ;;  %v1344_v60 = vpop.f32.mrf.mxu0 }
 0x17d   : > { %v1808_v57 = vpack.c.b16 %v1804_v45, %v1802_v14  ;;  %v1809_v58 = vpack.c.b16 %v1805_v55, %v1803_v54  ;;  %v1429_v59 = vpop.f32.mrf.mxu3  ;;  %v1373_v61 = vpop.f32.mrf.mxu1  ;;  %v1401_v47 = vadd.f32 %v1400_v56, %v3595_v53  ;;  %v1345_v3 = vadd.f32 %v1344_v60, %v3593_v41 }
 0x17f   : > { %1826 = vmatpush.bf16.msra.mxu2 %v1808_v57  ;;  %1845 = vmatpush.bf16.msra.mxu3 %v1809_v58  ;;  %v1430_v2 = vadd.f32 %v1429_v59, %v1401_v47  ;;  %v1374_v7 = vadd.f32 %v1373_v61, %v1345_v3 }
 0x181   : > { %v1449_v5 = vpack.c.bf16 %v1430_v2, %v1372_v24 }
 0x183   : > { %1827 = vmatpush.bf16.msra.mxu2 %v1806_v0  ;;  %1846 = vmatpush.bf16.msra.mxu3 %v1807_v63  ;;  %v1461_v11 = vunpack.c.l.b16 %v1449_v5  ;;  %v1462_v12 = vunpack.c.h.b16 %v1449_v5 }
 0x184   : > { %v1402_v4 = vpop.f32.mrf.mxu2  ;;  %v1347_v52 = vpop.f32.mrf.mxu0 }
 0x185   : > { %v1403_v6 = vadd.f32 %v1402_v4, %v3595_v53  ;;  %v1431_v18 = vpop.f32.mrf.mxu3  ;;  %v1376_v1 = vpop.f32.mrf.mxu1  ;;  %v1348_v28 = vadd.f32 %v1347_v52, %v3593_v41 }
 0x187   : > { %v1432_v50 = vadd.f32 %v1431_v18, %v1403_v6  ;;  %v1377_v49 = vadd.f32 %v1376_v1, %v1348_v28 }
 0x189   : > { %v1450_v10 = vpack.c.bf16 %v1432_v50, %v1374_v7 }
 0x18b   : > { %v1463_v15 = vunpack.c.l.b16 %v1450_v10  ;;  %v1464_v16 = vunpack.c.h.b16 %v1450_v10 }
 0x18c   : > { %v1405_v17 = vpop.f32.mrf.mxu2  ;;  %v1349_v26 = vpop.f32.mrf.mxu0 }
 0x18d   : > { %v1469_v20 = vpack.c.b16 %v1463_v15, %v1461_v11  ;;  %v1470_v21 = vpack.c.b16 %v1464_v16, %v1462_v12  ;;  %v1434_v23 = vpop.f32.mrf.mxu3  ;;  %v1378_v27 = vpop.f32.mrf.mxu1  ;;  %v1406_v44 = vadd.f32 %v1405_v17, %v3595_v53  ;;  %v1350_v33 = vadd.f32 %v1349_v26, %v3593_v41 }
 0x18f   : > { %1505 = vmatmul.bf16.vlgmr.msrb.gmra.mxu0 %v1469_v20  ;;  %1524 = vmatmul.bf16.vlgmr.msrb.gmra.mxu1 %v1470_v21  ;;  %v1435_v22 = vadd.f32 %v1434_v23, %v1406_v44  ;;  %v1379_v42 = vadd.f32 %v1378_v27, %v1350_v33 }
 0x191   : > { %v1451_v40 = vpack.c.bf16 %v1435_v22, %v1377_v49 }
 0x193   : > { %v1465_v14 = vunpack.c.l.b16 %v1451_v40  ;;  %v1466_v54 = vunpack.c.h.b16 %v1451_v40 }
 0x194   : > { %v1407_v35 = vpop.f32.mrf.mxu2  ;;  %v1352_v38 = vpop.f32.mrf.mxu0 }
 0x195   : > { %v1408_v36 = vadd.f32 %v1407_v35, %v3595_v53  ;;  %v1436_v37 = vpop.f32.mrf.mxu3  ;;  %v1381_v51 = vpop.f32.mrf.mxu1  ;;  %v1353_v59 = vadd.f32 %v1352_v38, %v3593_v41 }
 0x197   : > { %v1437_v46 = vadd.f32 %v1436_v37, %v1408_v36  ;;  %v1382_v62 = vadd.f32 %v1381_v51, %v1353_v59 }
 0x199   : > { %v1452_v13 = vpack.c.bf16 %v1437_v46, %v1379_v42 }
 0x19b   : > { %v1467_v45 = vunpack.c.l.b16 %v1452_v13  ;;  %v1468_v55 = vunpack.c.h.b16 %v1452_v13 }
 0x19c   : > { %v1410_v56 = vpop.f32.mrf.mxu2  ;;  %v1354_v39 = vpop.f32.mrf.mxu0 }
 0x19d   : > { %v1439_v34 = vpop.f32.mrf.mxu3  ;;  %v1471_v57 = vpack.c.b16 %v1467_v45, %v1465_v14  ;;  %v1472_v58 = vpack.c.b16 %v1468_v55, %v1466_v54  ;;  %v1411_v60 = vadd.f32 %v1410_v56, %v3595_v53  ;;  %v1383_v61 = vpop.f32.mrf.mxu1  ;;  %v1355_v25 = vadd.f32 %v1354_v39, %v3593_v41 }
 0x19f   : > { %1510 = vmatmul.bf16.gmra.mxu0 %v1471_v57  ;;  %1529 = vmatmul.bf16.gmra.mxu1 %v1472_v58  ;;  %v1440_v43 = vadd.f32 %v1439_v34, %v1411_v60  ;;  %v1384_v3 = vadd.f32 %v1383_v61, %v1355_v25 }
 0x1a1   : > { %v1453_v2 = vpack.c.bf16 %v1440_v43, %v1382_v62 }
 0x1a3   : > { %v1539_v18 = vunpack.c.l.b16 %v1453_v2  ;;  %v1540_v52 = vunpack.c.h.b16 %v1453_v2 }
 0x1a4   : > { %v1412_v47 = vpop.f32.mrf.mxu2 }
 0x1a5   : > { %v1413_v0 = vadd.f32 %v1412_v47, %v3595_v53  ;;  %v1441_v63 = vpop.f32.mrf.mxu3  ;;  %v1357_v24 = vpop.f32.mrf.mxu0 }
 0x1a6   : > { %v1386_v7 = vpop.f32.mrf.mxu1  ;;  %v1358_v15 = vadd.f32 %v1357_v24, %v3593_v41 }
 0x1a7   : > { %v1442_v4 = vadd.f32 %v1441_v63, %v1413_v0 }
 0x1a8   : > { %v1387_v20 = vadd.f32 %v1386_v7, %v1358_v15 }
 0x1a9   : > { %v1454_v6 = vpack.c.bf16 %v1442_v4, %v1384_v3 }
 0x1ab   : > { %v1541_v1 = vunpack.c.l.b16 %v1454_v6  ;;  %v1542_v5 = vunpack.c.h.b16 %v1454_v6 }
 0x1ac   : > { %v1415_v50 = vpop.f32.mrf.mxu2 }
 0x1ad   : > { %v1547_v10 = vpack.c.b16 %v1541_v1, %v1539_v18  ;;  %v1548_v11 = vpack.c.b16 %v1542_v5, %v1540_v52  ;;  %v1444_v12 = vpop.f32.mrf.mxu3  ;;  %v1416_v16 = vadd.f32 %v1415_v50, %v3595_v53  ;;  %v1359_v17 = vpop.f32.mrf.mxu0 }
 0x1ae   : > { %v1360_v23 = vadd.f32 %v1359_v17, %v3593_v41  ;;  %v1388_v28 = vpop.f32.mrf.mxu1 }
 0x1af   : > { %1583 = vmatmul.bf16.vlgmr.msrb.gmra.mxu2 %v1547_v10  ;;  %1602 = vmatmul.bf16.vlgmr.msrb.gmra.mxu3 %v1548_v11  ;;  %v1445_v21 = vadd.f32 %v1444_v12, %v1416_v16 }
 0x1b0   : > { %v1389_v22 = vadd.f32 %v1388_v28, %v1360_v23 }
 0x1b1   : > { %v1455_v49 = vpack.c.bf16 %v1445_v21, %v1387_v20 }
 0x1b3   : > { %v1543_v36 = vunpack.c.l.b16 %v1455_v49  ;;  %v1544_v37 = vunpack.c.h.b16 %v1455_v49 }
 0x1b4   : > { %v1417_v26 = vpop.f32.mrf.mxu2 }
 0x1b5   : > { %v1418_v27 = vadd.f32 %v1417_v26, %v3595_v53  ;;  %v1446_v44 = vpop.f32.mrf.mxu3 }
 0x1b7   : > { %v1447_v33 = vadd.f32 %v1446_v44, %v1418_v27 }
 0x1b9   : > { %v1456_v35 = vpack.c.bf16 %v1447_v33, %v1389_v22 }
 0x1bb   : > { %v1545_v38 = vunpack.c.l.b16 %v1456_v35  ;;  %v1546_v40 = vunpack.c.h.b16 %v1456_v35 }
 0x1bd   : > { %v1549_v42 = vpack.c.b16 %v1545_v38, %v1543_v36  ;;  %v1550_v46 = vpack.c.b16 %v1546_v40, %v1544_v37 }
 0x1bf   : > { %1588 = vmatmul.bf16.gmra.mxu2 %v1549_v42  ;;  %1607 = vmatmul.bf16.gmra.mxu3 %v1550_v46 }
 0x20c   : > { %v1506_v51 = vpop.f32.mrf.mxu0  ;;  %v1525_v13 = vpop.f32.mrf.mxu1 }
 0x20d   : > { %v1526_v41 = vadd.f32 %v1525_v13, %v1506_v51 }
 0x20f   : > { %v1614_v53 = vsel %vm1613_vm0, %v1526_v41, -inf }
 0x210   : > { %1615 = vmax.xlane.f32.xlu1 %v1614_v53 }
 0x214   : > { %v1508_v14 = vpop.f32.mrf.mxu0  ;;  %v1527_v54 = vpop.f32.mrf.mxu1 }
 0x215   : > { %v1528_v45 = vadd.f32 %v1527_v54, %v1508_v14 }
 0x217   : > { %v1617_v55 = vsel %vm1613_vm0, %v1528_v45, -inf }
 0x218   : > { %1618 = vmax.xlane.f32.xlu1 %v1617_v55 }
 0x21c   : > { %v1511_v56 = vpop.f32.mrf.mxu0  ;;  %v1530_v34 = vpop.f32.mrf.mxu1 }
 0x21d   : > { %v1531_v24 = vadd.f32 %v1530_v34, %v1511_v56 }
 0x21f   : > { %v1620_v18 = vsel %vm1613_vm0, %v1531_v24, -inf }
 0x224   : > { %v1513_v39 = vpop.f32.mrf.mxu0  ;;  %v1532_v57 = vpop.f32.mrf.mxu1 }
 0x225   : > { %v3615_v58 = vadd.f32 %v1532_v57, %v1513_v39 }
 0x227   : > { %v1623_v59 = vsel %vm1613_vm0, %v3615_v58, -inf }
 0x228   : > { %1624 = vmax.xlane.f32.xlu1 %v1623_v59 }
 0x232   : > { %v1584_v60 = vpop.f32.mrf.mxu2  ;;  %v1603_v61 = vpop.f32.mrf.mxu3 }
 0x233   : > { %v1604_v62 = vadd.f32 %v1603_v61, %v1584_v60 }
 0x235   : > { %v1626_v43 = vsel %vm1613_vm0, %v1604_v62, -inf }
 0x236   : > { %1627 = vmax.xlane.f32.xlu0 %v1626_v43 }
 0x23a   : > { %v1586_v25 = vpop.f32.mrf.mxu2  ;;  %v1605_v47 = vpop.f32.mrf.mxu3 }
 0x23b   : > { %v1606_v0 = vadd.f32 %v1605_v47, %v1586_v25 }
 0x23d   : > { %v1629_v63 = vsel %vm1613_vm0, %v1606_v0, -inf }
 0x23e   : > { %1630 = vmax.xlane.f32.xlu0 %v1629_v63 }
 0x242   : > { %v1589_v2 = vpop.f32.mrf.mxu2  ;;  %v1608_v3 = vpop.f32.mrf.mxu3 }
 0x243   : > { %v1609_v4 = vadd.f32 %v1608_v3, %v1589_v2 }
 0x245   : > { %v1632_v6 = vsel %vm1613_vm0, %v1609_v4, -inf }
 0x246   : > { %1633 = vmax.xlane.f32.xlu2 %v1632_v6  ;;  %1621 = vmax.xlane.f32.xlu0 %v1620_v18 }
 0x24a   : > { %v1591_v52 = vpop.f32.mrf.mxu2  ;;  %v1610_v1 = vpop.f32.mrf.mxu3 }
 0x24b   : > { %v1611_v5 = vadd.f32 %v1610_v1, %v1591_v52 }
 0x24d   : > { %v1635_v7 = vsel %vm1613_vm0, %v1611_v5, -inf }
 0x24e   : > { %1636 = vmax.xlane.f32.xlu2 %v1635_v7 }
 0x283   : > { %v1616_v50 = vpop.xlane.xlu1 %1615 }
 0x284   : > { %v1638_v10 = vsub.f32 %v1526_v41, %v1616_v50 }
 0x286   : > { %v1646_v11 = vmul.f32 1.442695, %v1638_v10 }
 0x288   : > { %2916 = vpow2.f32 %v1646_v11 }
 0x28b   : > { %v1619_v16 = vpop.xlane.xlu1 %1618 }
 0x28c   : > { %v1639_v21 = vsub.f32 %v1528_v45, %v1619_v16 }
 0x28e   : > { %v2917_v12 = vpop.eup %2916  ;;  %v1648_v26 = vmul.f32 1.442695, %v1639_v21 }
 0x28f   : > { %v1662_v15 = vsel %vm1613_vm0, %v2917_v12, 0.0 }
 0x290   : > { %1663 = vadd.xlane.f32.xlu1 %v1662_v15 }
 0x29b   : > { %v1625_v33 = vpop.xlane.xlu1 %1624 }
 0x29c   : > { %v1641_v46 = vsub.f32 %v3615_v58, %v1625_v33 }
 0x29e   : > { %v1652_v14 = vmul.f32 1.442695, %v1641_v46 }
 0x2a9   : > { %v1628_v17 = vpop.xlane.xlu0 %1627 }
 0x2aa   : > { %v1642_v20 = vsub.f32 %v1604_v62, %v1628_v17 }
 0x2ac   : > { %v1654_v23 = vmul.f32 1.442695, %v1642_v20 }
 0x2ae   : > { %2918 = vpow2.f32 %v1654_v23 }
 0x2af   : > { %2920 = vpow2.f32 %v1648_v26 }
 0x2b1   : > { %v1631_v27 = vpop.xlane.xlu0 %1630 }
 0x2b2   : > { %v1643_v28 = vsub.f32 %v1606_v0, %v1631_v27 }
 0x2b4   : > { %v2919_v44 = vpop.eup %2918  ;;  %v1656_v49 = vmul.f32 1.442695, %v1643_v28 }
 0x2b5   : > { %v1674_v22 = vsel %vm1613_vm0, %v2919_v44, 0.0  ;;  %v2921_v37 = vpop.eup %2920 }
 0x2b6   : > { %2922 = vpow2.f32 %v1656_v49  ;;  %1675 = vadd.xlane.f32.xlu2 %v1674_v22  ;;  %v1665_v41 = vsel %vm1613_vm0, %v2921_v37, 0.0 }
 0x2b9   : > { %v1634_v35 = vpop.xlane.xlu2 %1633  ;;  %v1622_v36 = vpop.xlane.xlu0 %1621 }
 0x2ba   : > { %v1644_v38 = vsub.f32 %v1609_v4, %v1634_v35  ;;  %v1640_v40 = vsub.f32 %v1531_v24, %v1622_v36 }
 0x2bc   : > { %v2923_v42 = vpop.eup %2922  ;;  %v1658_v51 = vmul.f32 1.442695, %v1644_v38  ;;  %v1650_v13 = vmul.f32 1.442695, %v1640_v40 }
 0x2bd   : > { %v1677_v53 = vsel %vm1613_vm0, %v2923_v42, 0.0 }
 0x2be   : > { %2924 = vpow2.f32 %v1658_v51  ;;  %1666 = vadd.xlane.f32.xlu2 %v1665_v41  ;;  %1678 = vadd.xlane.f32.xlu0 %v1677_v53 }
 0x2bf   : > { %2926 = vpow2.f32 %v1650_v13 }
 0x2c0   : > { %2928 = vpow2.f32 %v1652_v14 }
 0x2c1   : > { %v1637_v54 = vpop.xlane.xlu2 %1636 }
 0x2c2   : > { %v1645_v45 = vsub.f32 %v1611_v5, %v1637_v54 }
 0x2c4   : > { %v2925_v55 = vpop.eup %2924  ;;  %v1660_v56 = vmul.f32 1.442695, %v1645_v45  ;;  %v2966_v45 = vld [vmem:[%s3420_s20] sm:$0xff] }
 0x2c5   : > { %v2927_v34 = vpop.eup %2926  ;;  %v1680_v39 = vsel %vm1613_vm0, %v2925_v55, 0.0 }
 0x2c6   : > { %2930 = vpow2.f32 %v1660_v56  ;;  %1681 = vadd.xlane.f32.xlu0 %v1680_v39  ;;  %v1668_v57 = vsel %vm1613_vm0, %v2927_v34, 0.0  ;;  %v2929_v58 = vpop.eup %2928  ;;  %v2967_v56 = vld [vmem:[%s3420_s20 + $0x8] sm:$0xff] }
 0x2c7   : > { %1669 = vadd.xlane.f32.xlu2 %v1668_v57  ;;  %v1671_v61 = vsel %vm1613_vm0, %v2929_v58, 0.0 }
 0x2cc   : > { %v2931_v59 = vpop.eup %2930 }
 0x2cd   : > { %v1683_v60 = vsel %vm1613_vm0, %v2931_v59, 0.0 }
 0x2ce   : > { %1684 = vadd.xlane.f32.xlu1 %v1683_v60  ;;  %1672 = vadd.xlane.f32.xlu0 %v1671_v61  ;;  %v2968_v61 = vld [vmem:[%s3420_s20 + $0x10] sm:$0xff] }
 0x303   : > { %v1664_v62 = vpop.xlane.xlu1 %1663 }
 0x304   : > { %2932 = vrcp.f32 %v1664_v62 }
 0x30a   : > { %v2933_v0 = vpop.eup %2932 }
 0x30b   : > { %v1694_v24 = vmul.f32 %v2933_v0, %v2917_v12 }
 0x30d   : > { %v1702_v6 = vpack.c.bf16 %v1694_v24, %v1694_v24 }
 0x30f   : > { %v1714_v11 = vunpack.c.l.b16 %v1702_v6  ;;  %v2970_v6 = vld [vmem:[%s3420_s20 + $0x20] sm:$0xff] }
 0x329   : > { %v1676_v43 = vpop.xlane.xlu2 %1675 }
 0x32a   : > { %2934 = vrcp.f32 %v1676_v43  ;;  %v2969_v43 = vld [vmem:[%s3420_s20 + $0x18] sm:$0xff] }
 0x330   : > { %v2935_v63 = vpop.eup %2934 }
 0x331   : > { %v1667_v25 = vpop.xlane.xlu2 %1666  ;;  %v1679_v47 = vpop.xlane.xlu0 %1678  ;;  %v1698_v2 = vmul.f32 %v2935_v63, %v2919_v44 }
 0x332   : > { %2936 = vrcp.f32 %v1667_v25 }
 0x333   : > { %2938 = vrcp.f32 %v1679_v47  ;;  %v1706_v1 = vpack.c.bf16 %v1698_v2, %v1698_v2 }
 0x335   : > { %v1788_v16 = vunpack.c.l.b16 %v1706_v1 }
 0x338   : > { %v2937_v3 = vpop.eup %2936 }
 0x339   : > { %v2939_v4 = vpop.eup %2938  ;;  %v1695_v18 = vmul.f32 %v2937_v3, %v2921_v37  ;;  %v1682_v52 = vpop.xlane.xlu0 %1681 }
 0x33a   : > { %v1699_v5 = vmul.f32 %v2939_v4, %v2923_v42  ;;  %v1670_v7 = vpop.xlane.xlu2 %1669 }
 0x33b   : > { %v1703_v50 = vpack.c.bf16 %v1695_v18, %v1695_v18  ;;  %2940 = vrcp.f32 %v1670_v7 }
 0x33c   : > { %v1707_v10 = vpack.c.bf16 %v1699_v5, %v1699_v5  ;;  %2942 = vrcp.f32 %v1682_v52  ;;  %v2971_v52 = vld [vmem:[%s3420_s20 + $0x28] sm:$0xff] }
 0x33d   : > { %v1715_v15 = vunpack.c.l.b16 %v1703_v50 }
 0x33e   : > { %v1789_v17 = vunpack.c.l.b16 %v1707_v10 }
 0x33f   : > { %v1718_v20 = vpack.c.b16 %v1715_v15, %v1714_v11 }
 0x340   : > { %v1792_v21 = vpack.c.b16 %v1789_v17, %v1788_v16  ;;  %v2972_v16 = vld [vmem:[%s3420_s20 + $0x30] sm:$0xff] }
 0x341   : > { %v1673_v12 = vpop.xlane.xlu0 %1672  ;;  %2703 = vmatmul.msk.bf16.vlgmr.msra.gmra.mxu0 %vm1613_vm0, %v1718_v20  ;;  %2705 = vmatmul.msk.bf16.vlgmr.msra.gmra.mxu1 %vm1613_vm0, %v1718_v20  ;;  %v1685_v23 = vpop.xlane.xlu1 %1684  ;;  %v2973_v20 = vld [vmem:[%s3420_s20 + $0x38] sm:$0xff] }
 0x342   : > { %v2941_v26 = vpop.eup %2940  ;;  %2707 = vmatmul.msk.bf16.vlgmr.msra.gmra.mxu2 %vm1613_vm0, %v1792_v21  ;;  %2709 = vmatmul.msk.bf16.vlgmr.msra.gmra.mxu3 %vm1613_vm0, %v1792_v21  ;;  %2944 = vrcp.f32 %v1673_v12 }
 0x343   : > { %v2943_v27 = vpop.eup %2942  ;;  %2946 = vrcp.f32 %v1685_v23  ;;  %v1696_v28 = vmul.f32 %v2941_v26, %v2927_v34 }
 0x344   : > { %v1700_v44 = vmul.f32 %v2943_v27, %v2925_v55 }
 0x345   : > { %v1704_v33 = vpack.c.bf16 %v1696_v28, %v1696_v28 }
 0x346   : > { %v1708_v36 = vpack.c.bf16 %v1700_v44, %v1700_v44 }
 0x347   : > { %v1716_v42 = vunpack.c.l.b16 %v1704_v33 }
 0x348   : > { %v2945_v49 = vpop.eup %2944  ;;  %v1790_v51 = vunpack.c.l.b16 %v1708_v36 }
 0x349   : > { %v2947_v22 = vpop.eup %2946  ;;  %v1697_v35 = vmul.f32 %v2945_v49, %v2929_v58 }
 0x34a   : > { %v1701_v37 = vmul.f32 %v2947_v22, %v2931_v59 }
 0x34b   : > { %v1705_v38 = vpack.c.bf16 %v1697_v35, %v1697_v35 }
 0x34c   : > { %v1709_v40 = vpack.c.bf16 %v1701_v37, %v1701_v37 }
 0x34d   : > { %v1717_v46 = vunpack.c.l.b16 %v1705_v38 }
 0x34e   : > { %v1791_v13 = vunpack.c.l.b16 %v1709_v40 }
 0x34f   : > { %v1719_v41 = vpack.c.b16 %v1717_v46, %v1716_v42 }
 0x350   : > { %v1793_v53 = vpack.c.b16 %v1791_v13, %v1790_v51 }
 0x351   : > { %2704 = vmatmul.msk.bf16.gmra.mxu0 %vm1613_vm0, %v1719_v41  ;;  %2706 = vmatmul.msk.bf16.gmra.mxu1 %vm1613_vm0, %v1719_v41 }
 0x352   : > { %2708 = vmatmul.msk.bf16.gmra.mxu2 %vm1613_vm0, %v1793_v53  ;;  %2710 = vmatmul.msk.bf16.gmra.mxu3 %vm1613_vm0, %v1793_v53 }
 0x3be   : > { %v1755_v14 = vpop.f32.mrf.mxu0  ;;  %v1774_v54 = vpop.f32.mrf.mxu1 }
 0x3bf   : > { %v3642_v55 = vadd.f32 %v2966_v45, %v1755_v14  ;;  %v3645_v34 = vadd.f32 %v2967_v56, %v1774_v54 }
 0x3c1   : > { %v1858_v39 = vadd.f32 %v3645_v34, %v3642_v55 }
 0x3c3   : > { %1859 = vadd.xlane.f32.xlu1 %v1858_v39 }
 0x3c5   : > { %v1829_v57 = vpop.f32.mrf.mxu2  ;;  %v1848_v58 = vpop.f32.mrf.mxu3 }
 0x3c6   : > { %v1757_v59 = vpop.f32.mrf.mxu0  ;;  %v1776_v60 = vpop.f32.mrf.mxu1  ;;  %v3652_v0 = vadd.f32 %v1829_v57, %v3517_v29  ;;  %v3655_v63 = vadd.f32 %v1848_v58, %v3523_v31 }
 0x3c7   : > { %v1758_v62 = vadd.f32 %v2968_v61, %v1757_v59  ;;  %v1777_v25 = vadd.f32 %v2969_v43, %v1776_v60 }
 0x3c8   : > { %v1870_v7 = vadd.f32 %v3655_v63, %v3652_v0 }
 0x3c9   : > { %v1861_v47 = vadd.f32 %v1777_v25, %v1758_v62 }
 0x3cb   : > { %1862 = vadd.xlane.f32.xlu2 %v1861_v47 }
 0x3cd   : > { %v1831_v24 = vpop.f32.mrf.mxu2  ;;  %v1850_v2 = vpop.f32.mrf.mxu3 }
 0x3ce   : > { %v1760_v3 = vpop.f32.mrf.mxu0  ;;  %v1779_v4 = vpop.f32.mrf.mxu1  ;;  %v3662_v29 = vadd.f32 %v1831_v24, %v3520_v30  ;;  %v3665_v31 = vadd.f32 %v1850_v2, %v3526_v32 }
 0x3cf   : > { %v1761_v18 = vadd.f32 %v2970_v6, %v1760_v3  ;;  %v1780_v1 = vadd.f32 %v2971_v52, %v1779_v4 }
 0x3d0   : > { %v1873_v12 = vadd.f32 %v3665_v31, %v3662_v29 }
 0x3d1   : > { %v1864_v5 = vadd.f32 %v1780_v1, %v1761_v18 }
 0x3d3   : > { %1865 = vadd.xlane.f32.xlu0 %v1864_v5  ;;  %1871 = vadd.xlane.f32.xlu2 %v1870_v7 }
 0x3d5   : > { %v1834_v50 = vpop.f32.mrf.mxu2  ;;  %v1853_v10 = vpop.f32.mrf.mxu3 }
 0x3d6   : > { %v1762_v11 = vpop.f32.mrf.mxu0  ;;  %v1781_v15 = vpop.f32.mrf.mxu1  ;;  %v3678_v32 = vadd.f32 %v1834_v50, %v3543_v19  ;;  %v3681_v23 = vadd.f32 %v1853_v10, %v3549_v48  ;;  %v3211_v19 = vmov 256.0  }
 0x3d7   : > { %v3668_v17 = vadd.f32 %v2972_v16, %v1762_v11  ;;  %v3671_v21 = vadd.f32 %v2973_v20, %v1781_v15  ;;  %2948 = vrcp.f32 %v3211_v19 }
 0x3d8   : > { %v1876_v22 = vadd.f32 %v3681_v23, %v3678_v32 }
 0x3d9   : > { %v1867_v30 = vadd.f32 %v3671_v21, %v3668_v17 }
 0x3db   : > { %1874 = vadd.xlane.f32.xlu0 %v1873_v12  ;;  %1868 = vadd.xlane.f32.xlu1 %v1867_v30 }
 0x3dd   : > { %v1836_v26 = vpop.f32.mrf.mxu2  ;;  %v1855_v27 = vpop.f32.mrf.mxu3 }
 0x3de   : > { %v3684_v28 = vadd.f32 %v1836_v26, %v3546_v8  ;;  %v3687_v44 = vadd.f32 %v1855_v27, %v3552_v9  ;;  %v2949_v48 = vpop.eup %2948 }
 0x3df   : > { %v1883_v33 = vmul.f32 256.0, %v2949_v48  ;;  %vm1887_vm1 = vweird.f32 %v2949_v48 }
 0x3e0   : > { %v1879_v49 = vadd.f32 %v3687_v44, %v3684_v28 }
 0x3e1   : > { %v1884_v35 = vsub.f32 1.0, %v1883_v33 }
 0x3e2   : > { %1880 = vadd.xlane.f32.xlu2 %v1879_v49 }
 0x3e3   : > { %1877 = vadd.xlane.f32.xlu1 %v1876_v22  ;;  %v1885_v36 = vmul.f32 %v2949_v48, %v1884_v35 }
 0x3e5   : > { %v1886_v37 = vadd.f32 %v2949_v48, %v1885_v36 }
 0x3e7   : > { %v3693_v8 = vsel %vm1887_vm1, %v2949_v48, %v1886_v37 }
 0x436   : > { %v1860_v9 = vpop.xlane.xlu1 %1859 }
 0x437   : > { %v1889_v38 = vmul.f32 %v3693_v8, %v1860_v9 }
 0x439   : > { %v3697_v40 = vsub.f32 %v3642_v55, %v1889_v38  ;;  %v3700_v42 = vsub.f32 %v3645_v34, %v1889_v38 }
 0x43b   : > { %v1913_v46 = vmul.f32 %v3697_v40, %v3697_v40  ;;  %v1914_v51 = vmul.f32 %v3700_v42, %v3700_v42 }
 0x43d   : > { %v1929_v13 = vadd.f32 %v1914_v51, %v1913_v46 }
 0x43e   : > { %v1863_v41 = vpop.xlane.xlu2 %1862 }
 0x43f   : > { %v1890_v53 = vmul.f32 %v3693_v8, %v1863_v41  ;;  %1930 = vadd.xlane.f32.xlu0 %v1929_v13 }
 0x441   : > { %v3707_v14 = vsub.f32 %v1758_v62, %v1890_v53  ;;  %v3709_v54 = vsub.f32 %v1777_v25, %v1890_v53 }
 0x443   : > { %v1915_v45 = vmul.f32 %v3707_v14, %v3707_v14  ;;  %v1916_v55 = vmul.f32 %v3709_v54, %v3709_v54 }
 0x445   : > { %v1932_v56 = vadd.f32 %v1916_v55, %v1915_v45  ;;  %v2065_v45 = vld [vmem:[%s3942_s6] sm:$0x3] }
 0x446   : > { %v1866_v34 = vpop.xlane.xlu0 %1865  ;;  %v1872_v39 = vpop.xlane.xlu2 %1871 }
 0x447   : > { %v1891_v57 = vmul.f32 %v3693_v8, %v1866_v34  ;;  %v1893_v58 = vmul.f32 %v3693_v8, %v1872_v39  ;;  %1933 = vadd.xlane.f32.xlu1 %v1932_v56 }
 0x449   : > { %v3717_v59 = vsub.f32 %v1761_v18, %v1891_v57  ;;  %v3719_v60 = vsub.f32 %v1780_v1, %v1891_v57  ;;  %v3722_v61 = vsub.f32 %v3652_v0, %v1893_v58  ;;  %v3725_v62 = vsub.f32 %v3655_v63, %v1893_v58  ;;  %v2087_v57 = vld [vmem:[%s3943_s7] sm:$0x3] }
 0x44b   : > { %v1917_v43 = vmul.f32 %v3717_v59, %v3717_v59  ;;  %v1918_v25 = vmul.f32 %v3719_v60, %v3719_v60  ;;  %v1921_v47 = vmul.f32 %v3722_v61, %v3722_v61  ;;  %v1922_v24 = vmul.f32 %v3725_v62, %v3725_v62 }
 0x44d   : > { %v1935_v2 = vadd.f32 %v1918_v25, %v1917_v43  ;;  %v1941_v3 = vadd.f32 %v1922_v24, %v1921_v47  ;;  %v3793_v25 = vperm.slane %v2065_v45, 0  ;;  %v3795_v47 = vperm.slane %v2065_v45, 1 }
 0x44e   : > { %v1875_v4 = vpop.xlane.xlu0 %1874  ;;  %v1869_v0 = vpop.xlane.xlu1 %1868 }
 0x44f   : > { %v1894_v6 = vmul.f32 %v3693_v8, %v1875_v4  ;;  %v1892_v63 = vmul.f32 %v3693_v8, %v1869_v0  ;;  %1936 = vadd.xlane.f32.xlu2 %v1935_v2  ;;  %1942 = vadd.xlane.f32.xlu1 %v1941_v3  ;;  %v3799_v3 = vperm.slane %v2087_v57, 0  ;;  %v3801_v4 = vperm.slane %v2087_v57, 1 }
 0x451   : > { %v3738_v18 = vsub.f32 %v3662_v29, %v1894_v6  ;;  %v3741_v52 = vsub.f32 %v3665_v31, %v1894_v6  ;;  %v3744_v1 = vsub.f32 %v3668_v17, %v1892_v63  ;;  %v3747_v5 = vsub.f32 %v3671_v21, %v1892_v63 }
 0x453   : > { %v1923_v7 = vmul.f32 %v3738_v18, %v3738_v18  ;;  %v1924_v50 = vmul.f32 %v3741_v52, %v3741_v52  ;;  %v1919_v10 = vmul.f32 %v3744_v1, %v3744_v1  ;;  %v1920_v29 = vmul.f32 %v3747_v5, %v3747_v5 }
 0x455   : > { %v1881_v31 = vpop.xlane.xlu2 %1880  ;;  %v1944_v11 = vadd.f32 %v1924_v50, %v1923_v7  ;;  %v1938_v15 = vadd.f32 %v1920_v29, %v1919_v10 }
 0x456   : > { %v1896_v16 = vmul.f32 %v3693_v8, %v1881_v31  ;;  %v1878_v17 = vpop.xlane.xlu1 %1877 }
 0x457   : > { %v1895_v20 = vmul.f32 %v3693_v8, %v1878_v17  ;;  %1945 = vadd.xlane.f32.xlu2 %v1944_v11  ;;  %1939 = vadd.xlane.f32.xlu0 %v1938_v15 }
 0x458   : > { %v3760_v21 = vsub.f32 %v3684_v28, %v1896_v16  ;;  %v3763_v12 = vsub.f32 %v3687_v44, %v1896_v16 }
 0x459   : > { %v3766_v30 = vsub.f32 %v3678_v32, %v1895_v20  ;;  %v3769_v26 = vsub.f32 %v3681_v23, %v1895_v20 }
 0x45a   : > { %v1927_v27 = vmul.f32 %v3760_v21, %v3760_v21  ;;  %v1928_v49 = vmul.f32 %v3763_v12, %v3763_v12 }
 0x45b   : > { %v1925_v22 = vmul.f32 %v3766_v30, %v3766_v30  ;;  %v1926_v28 = vmul.f32 %v3769_v26, %v3769_v26 }
 0x45c   : > { %v1950_v44 = vadd.f32 %v1928_v49, %v1927_v27 }
 0x45d   : > { %v1947_v19 = vadd.f32 %v1926_v28, %v1925_v22 }
 0x45e   : > { %1951 = vadd.xlane.f32.xlu1 %v1950_v44 }
 0x45f   : > { %1948 = vadd.xlane.f32.xlu0 %v1947_v19 }
 0x4b2   : > { %v1931_v32 = vpop.xlane.xlu0 %1930 }
 0x4b3   : > { %v1953_v23 = vmul.f32 %v1931_v32, %v3693_v8 }
 0x4b5   : > { %v1961_v48 = vadd.f32 1e-05, %v1953_v23 }
 0x4b7   : > { %2950 = vrsqrt.f32 %v1961_v48  ;;  %vm1975_vm3 = vweird.f32 %v1961_v48 }
 0x4ba   : > { %v1934_v33 = vpop.xlane.xlu1 %1933 }
 0x4bb   : > { %v1954_v35 = vmul.f32 %v1934_v33, %v3693_v8 }
 0x4bd   : > { %v2951_v36 = vpop.eup %2950  ;;  %v1962_v37 = vadd.f32 1e-05, %v1954_v35 }
 0x4be   : > { %v1970_v9 = vmul.f32 %v2951_v36, %v1961_v48  ;;  %vm1976_vm2 = vweird.f32 %v2951_v36 }
 0x4bf   : > { %2952 = vrsqrt.f32 %v1962_v37  ;;  %vm1977_vm4 = vmor %vm1975_vm3, %vm1976_vm2  ;;  %vm1985_vm6 = vweird.f32 %v1962_v37 }
 0x4c0   : > { %v1971_v38 = vmul.f32 %v2951_v36, %v1970_v9 }
 0x4c2   : > { %v1972_v46 = vmul.f32 0.5, %v1971_v38  ;;  %v1937_v51 = vpop.xlane.xlu2 %1936  ;;  %v1943_v13 = vpop.xlane.xlu1 %1942 }
 0x4c3   : > { %v1955_v41 = vmul.f32 %v1937_v51, %v3693_v8  ;;  %v1957_v53 = vmul.f32 %v1943_v13, %v3693_v8 }
 0x4c4   : > { %v1973_v55 = vsub.f32 1.5, %v1972_v46 }
 0x4c5   : > { %v2953_v56 = vpop.eup %2952  ;;  %v3786_v34 = vadd.f32 1e-05, %v1955_v41  ;;  %v3788_v39 = vadd.f32 1e-05, %v1957_v53 }
 0x4c6   : > { %v1974_v58 = vmul.f32 %v2951_v36, %v1973_v55  ;;  %v1980_v43 = vmul.f32 %v2953_v56, %v1962_v37  ;;  %vm1986_vm5 = vweird.f32 %v2953_v56 }
 0x4c7   : > { %2954 = vrsqrt.f32 %v3786_v34  ;;  %vm1987_vm7 = vmor %vm1985_vm6, %vm1986_vm5  ;;  %vm1995_vm10 = vweird.f32 %v3786_v34  ;;  %vm2015_vm12 = vweird.f32 %v3788_v39 }
 0x4c8   : > { %v1978_v24 = vsel %vm1977_vm4, %v2951_v36, %v1974_v58  ;;  %v1981_v2 = vmul.f32 %v2953_v56, %v1980_v43  ;;  %2956 = vrsqrt.f32 %v3788_v39 }
 0x4c9   : > { %v2049_v0 = vmul.f32 %v1978_v24, %v3697_v40  ;;  %v2050_v6 = vmul.f32 %v1978_v24, %v3700_v42 }
 0x4ca   : > { %v1982_v63 = vmul.f32 0.5, %v1981_v2  ;;  %v1946_v7 = vpop.xlane.xlu2 %1945  ;;  %v1940_v50 = vpop.xlane.xlu0 %1939 }
 0x4cb   : > { %v2071_v10 = vmul.f32 %v3793_v25, %v2049_v0  ;;  %v2072_v29 = vmul.f32 %v3795_v47, %v2050_v6  ;;  %v1958_v31 = vmul.f32 %v1946_v7, %v3693_v8  ;;  %v1956_v11 = vmul.f32 %v1940_v50, %v3693_v8 }
 0x4cc   : > { %v1983_v15 = vsub.f32 1.5, %v1982_v63 }
 0x4cd   : > { %v2955_v16 = vpop.eup %2954  ;;  %v2093_v17 = vadd.f32 %v3799_v3, %v2071_v10  ;;  %v2094_v40 = vadd.f32 %v3801_v4, %v2072_v29  ;;  %v3811_v42 = vadd.f32 1e-05, %v1958_v31  ;;  %v3813_v20 = vadd.f32 1e-05, %v1956_v11 }
 0x4ce   : > { %v2957_v27 = vpop.eup %2956  ;;  %v1984_v49 = vmul.f32 %v2953_v56, %v1983_v15  ;;  %v1990_v22 = vmul.f32 %v2955_v16, %v3786_v34  ;;  %vm1996_vm8 = vweird.f32 %v2955_v16 }
 0x4cf   : > { %2109 = vst [vmem:[%s3818_s23] sm:$0xff] %v2093_v17  ;;  %v2010_v28 = vmul.f32 %v2957_v27, %v3788_v39  ;;  %2958 = vrsqrt.f32 %v3811_v42  ;;  %vm2016_vm9 = vweird.f32 %v2957_v27  ;;  %vm1997_vm11 = vmor %vm1995_vm10, %vm1996_vm8  ;;  %vm2025_vm0 = vweird.f32 %v3811_v42 }
 0x4d0   : > { %2110 = vst [vmem:[%s3818_s23 + $0x8] sm:$0xff] %v2094_v40  ;;  %v1988_v44 = vsel %vm1987_vm7, %v2953_v56, %v1984_v49  ;;  %v1991_v19 = vmul.f32 %v2955_v16, %v1990_v22  ;;  %2960 = vrsqrt.f32 %v3813_v20  ;;  %vm2017_vm13 = vmor %vm2015_vm12, %vm2016_vm9  ;;  %vm2005_vm2 = vweird.f32 %v3813_v20 }
 0x4d1   : > { %v2051_v32 = vmul.f32 %v1988_v44, %v3707_v14  ;;  %v2052_v23 = vmul.f32 %v1988_v44, %v3709_v54  ;;  %v2011_v48 = vmul.f32 %v2957_v27, %v2010_v28  ;;  %v1952_v33 = vpop.xlane.xlu1 %1951 }
 0x4d2   : > { %v1992_v35 = vmul.f32 0.5, %v1991_v19  ;;  %v1960_v36 = vmul.f32 %v1952_v33, %v3693_v8  ;;  %v1949_v37 = vpop.xlane.xlu0 %1948 }
 0x4d3   : > { %v2073_v9 = vmul.f32 %v3793_v25, %v2051_v32  ;;  %v2074_v38 = vmul.f32 %v3795_v47, %v2052_v23  ;;  %v2012_v46 = vmul.f32 0.5, %v2011_v48  ;;  %v1959_v51 = vmul.f32 %v1949_v37, %v3693_v8 }
 0x4d4   : > { %v1993_v13 = vsub.f32 1.5, %v1992_v35  ;;  %v3831_v14 = vadd.f32 1e-05, %v1960_v36 }
 0x4d5   : > { %v2959_v54 = vpop.eup %2958  ;;  %v2095_v41 = vadd.f32 %v3799_v3, %v2073_v9  ;;  %v2096_v53 = vadd.f32 %v3801_v4, %v2074_v38  ;;  %v2013_v45 = vsub.f32 1.5, %v2012_v46  ;;  %v3835_v55 = vadd.f32 1e-05, %v1959_v51 }
 0x4d6   : > { %v2961_v56 = vpop.eup %2960  ;;  %v1994_v57 = vmul.f32 %v2955_v16, %v1993_v13  ;;  %v2020_v8 = vmul.f32 %v2959_v54, %v3811_v42  ;;  %2962 = vrsqrt.f32 %v3831_v14  ;;  %vm2026_vm14 = vweird.f32 %v2959_v54 }
 0x4d7   : > { %2111 = vst [vmem:[%s3818_s23 + $0x10] sm:$0xff] %v2095_v41  ;;  %v2014_v58 = vmul.f32 %v2957_v27, %v2013_v45  ;;  %v2000_v43 = vmul.f32 %v2961_v56, %v3813_v20  ;;  %2964 = vrsqrt.f32 %v3835_v55  ;;  %vm2006_vm15 = vweird.f32 %v2961_v56  ;;  %vm2027_vm1 = vmor %vm2025_vm0, %vm2026_vm14 }
 0x4d8   : > { %2112 = vst [vmem:[%s3818_s23 + $0x18] sm:$0xff] %v2096_v53  ;;  %v1998_v24 = vsel %vm1997_vm11, %v2955_v16, %v1994_v57  ;;  %v2021_v2 = vmul.f32 %v2959_v54, %v2020_v8  ;;  %vm2007_vm3 = vmor %vm2005_vm2, %vm2006_vm15  ;;  %vm2045_vm5 = vweird.f32 %v3831_v14  ;;  %vm2035_vm8 = vweird.f32 %v3835_v55 }
 0x4d9   : > { %v2053_v34 = vmul.f32 %v1998_v24, %v3717_v59  ;;  %v2054_v0 = vmul.f32 %v1998_v24, %v3719_v60  ;;  %v2018_v6 = vsel %vm2017_vm13, %v2957_v27, %v2014_v58  ;;  %v2001_v63 = vmul.f32 %v2961_v56, %v2000_v43 }
 0x4da   : > { %v2057_v7 = vmul.f32 %v2018_v6, %v3722_v61  ;;  %v2058_v50 = vmul.f32 %v2018_v6, %v3725_v62  ;;  %v2022_v39 = vmul.f32 0.5, %v2021_v2 }
 0x4db   : > { %v2075_v10 = vmul.f32 %v3793_v25, %v2053_v34  ;;  %v2076_v29 = vmul.f32 %v3795_v47, %v2054_v0  ;;  %v2002_v31 = vmul.f32 0.5, %v2001_v63 }
 0x4dc   : > { %v2963_v11 = vpop.eup %2962  ;;  %v2079_v15 = vmul.f32 %v3793_v25, %v2057_v7  ;;  %v2080_v59 = vmul.f32 %v3795_v47, %v2058_v50  ;;  %v2023_v60 = vsub.f32 1.5, %v2022_v39 }
 0x4dd   : > { %v2097_v61 = vadd.f32 %v3799_v3, %v2075_v10  ;;  %v2098_v62 = vadd.f32 %v3801_v4, %v2076_v29  ;;  %v2003_v16 = vsub.f32 1.5, %v2002_v31  ;;  %v2040_v17 = vmul.f32 %v2963_v11, %v3831_v14  ;;  %v2965_v40 = vpop.eup %2964 }
 0x4de   : > { %v2101_v27 = vadd.f32 %v3799_v3, %v2079_v15  ;;  %v2102_v49 = vadd.f32 %v3801_v4, %v2080_v59  ;;  %v2024_v22 = vmul.f32 %v2959_v54, %v2023_v60  ;;  %v2030_v19 = vmul.f32 %v2965_v40, %v3835_v55 }
 0x4df   : > { %2113 = vst [vmem:[%s3818_s23 + $0x20] sm:$0xff] %v2097_v61  ;;  %v2004_v28 = vmul.f32 %v2961_v56, %v2003_v16  ;;  %v2041_v44 = vmul.f32 %v2963_v11, %v2040_v17  ;;  %vm2046_vm4 = vweird.f32 %v2963_v11  ;;  %vm2036_vm7 = vweird.f32 %v2965_v40 }
 0x4e0   : > { %2114 = vst [vmem:[%s3818_s23 + $0x28] sm:$0xff] %v2098_v62  ;;  %v2028_v32 = vsel %vm2027_vm1, %v2959_v54, %v2024_v22  ;;  %v2031_v20 = vmul.f32 %v2965_v40, %v2030_v19  ;;  %vm2047_vm6 = vmor %vm2045_vm5, %vm2046_vm4 }
 0x4e1   : > { %2117 = vst [vmem:[%s3818_s23 + $0x40] sm:$0xff] %v2101_v27  ;;  %v2059_v23 = vmul.f32 %v2028_v32, %v3738_v18  ;;  %v2060_v48 = vmul.f32 %v2028_v32, %v3741_v52  ;;  %v2008_v33 = vsel %vm2007_vm3, %v2961_v56, %v2004_v28  ;;  %v2042_v42 = vmul.f32 0.5, %v2041_v44  ;;  %vm2037_vm9 = vmor %vm2035_vm8, %vm2036_vm7 }
 0x4e2   : > { %2118 = vst [vmem:[%s3818_s23 + $0x48] sm:$0xff] %v2102_v49  ;;  %v2055_v35 = vmul.f32 %v2008_v33, %v3744_v1  ;;  %v2056_v36 = vmul.f32 %v2008_v33, %v3747_v5  ;;  %v2032_v46 = vmul.f32 0.5, %v2031_v20 }
 0x4e3   : > { %v2081_v37 = vmul.f32 %v3793_v25, %v2059_v23  ;;  %v2082_v9 = vmul.f32 %v3795_v47, %v2060_v48  ;;  %v2043_v38 = vsub.f32 1.5, %v2042_v42 }
 0x4e4   : > { %v2077_v18 = vmul.f32 %v3793_v25, %v2055_v35  ;;  %v2078_v52 = vmul.f32 %v3795_v47, %v2056_v36  ;;  %v2033_v41 = vsub.f32 1.5, %v2032_v46 }
 0x4e5   : > { %v2103_v51 = vadd.f32 %v3799_v3, %v2081_v37  ;;  %v2104_v1 = vadd.f32 %v3801_v4, %v2082_v9  ;;  %v2044_v5 = vmul.f32 %v2963_v11, %v2043_v38 }
 0x4e6   : > { %v2099_v13 = vadd.f32 %v3799_v3, %v2077_v18  ;;  %v2100_v54 = vadd.f32 %v3801_v4, %v2078_v52  ;;  %v2034_v57 = vmul.f32 %v2965_v40, %v2033_v41 }
 0x4e7   : > { %2119 = vst [vmem:[%s3818_s23 + $0x50] sm:$0xff] %v2103_v51  ;;  %v2048_v53 = vsel %vm2047_vm6, %v2963_v11, %v2044_v5 }
 0x4e8   : > { %2120 = vst [vmem:[%s3818_s23 + $0x58] sm:$0xff] %v2104_v1  ;;  %v2063_v45 = vmul.f32 %v2048_v53, %v3760_v21  ;;  %v2064_v56 = vmul.f32 %v2048_v53, %v3763_v12  ;;  %v2038_v21 = vsel %vm2037_vm9, %v2965_v40, %v2034_v57 }
 0x4e9   : > { %2115 = vst [vmem:[%s3818_s23 + $0x30] sm:$0xff] %v2099_v13  ;;  %v2061_v12 = vmul.f32 %v2038_v21, %v3766_v30  ;;  %v2062_v55 = vmul.f32 %v2038_v21, %v3769_v26 }
 0x4ea   : > { %2116 = vst [vmem:[%s3818_s23 + $0x38] sm:$0xff] %v2100_v54  ;;  %v2085_v14 = vmul.f32 %v3793_v25, %v2063_v45  ;;  %v2086_v8 = vmul.f32 %v3795_v47, %v2064_v56 }
 0x4eb   : > { %v2083_v24 = vmul.f32 %v3793_v25, %v2061_v12  ;;  %v2084_v2 = vmul.f32 %v3795_v47, %v2062_v55 }
 0x4ec   : > { %v2107_v58 = vadd.f32 %v3799_v3, %v2085_v14  ;;  %v2108_v43 = vadd.f32 %v3801_v4, %v2086_v8 }
 0x4ed   : > { %v2105_v34 = vadd.f32 %v3799_v3, %v2083_v24  ;;  %v2106_v30 = vadd.f32 %v3801_v4, %v2084_v2 }
 0x4ee   : > { %2123 = vst [vmem:[%s3818_s23 + $0x70] sm:$0xff] %v2107_v58 }
 0x4ef   : > { %2124 = vst [vmem:[%s3818_s23 + $0x78] sm:$0xff] %v2108_v43 }
 0x4f0   : > { %2121 = vst [vmem:[%s3818_s23 + $0x60] sm:$0xff] %v2105_v34 }
 0x4f1   : > { %2122 = vst [vmem:[%s3818_s23 + $0x68] sm:$0xff] %v2106_v30 }
 0x4f2   : > { %3151 = shalt.err (!%p3148_p9)
}
 0x4f3   : > { %s3212_s18 = smov 256   ;;  %s3213_s4 = smov 16  }
 0x4f4   : > { %2843 = dma.vmem_to_hbm [thread:$0]  (%p3348_p7), %s2140_s9, 2048, %s2142_s12, %s2126_s26, %s3212_s18, %s3212_s18, %s3213_s4  }
 0x4f5 PF: > { %s2156_s17 = sand.u32 1, %s3190_s27   ;;  %p3974_p12 = scmp.ge.s32.totalorder %s3202_s30, 2 }
 0x4f6   : > { %s2157_s25 = scalar_lea.sflag [#allocation4], %s2156_s17 }
 0x4f7   : > { %p2863_p13 = pnand %p3974_p12, %p3294_p6 }
 0x4f9   : > { %p2864_p0 = pneg %p2863_p13 }
 0x4fb   : > { %3185 = dma.done.wait (%p2864_p0), %s2157_s25, 2048  }
 0x4fc   : > { %3187 = vsyncadd (%p2864_p0), %s2157_s25, 4294965248  ;;  %s3975_s30 = sld [smem:[#allocation19_spill]]  ;;  %s3978_s27 = smov %s3194_s28 }
 0x4fd   : > { %s3976_s3 = sld [smem:[#allocation17_spill]] }
 0x4fe   : > { %s3977_s29 = sld [smem:[#allocation20_spill]] }
 0x502   : > { %p25_p3 = scmp.ge.s32.totalorder %s3975_s30, 4  }
 0x503   : > { %s3979_s28 = smov %s3976_s3 }
 0x504   :  { %27 = sbr.rel (!%p25_p3) target bundleno = 12 (0xc), region = 122 }
 0x509   :  { %2163 = vsyncpa [#allocation3], 1 }
 0x50a   :  { %2165 = vsyncpa [#allocation3 + $0x1], 1 }
 0x50b   :  { %2166 = vsyncpa [#allocation6], 1 }
 0x50c   :  { %2168 = vsyncpa [#allocation6 + $0x1], 1 }
 0x50d   :  { %2169 = vsyncpa [#allocation9], 1 }
 0x50e   :  { %2170 = vsyncpa [#allocation4], 1 }
 0x50f   :  { %2172 = vsyncpa [#allocation4 + $0x1], 1 }

</bundles_post_ra>
